<compile_context>
chip_gen: v7x
topology: tpu7x:2x2x1
jax: 0.10.0
libtpu: 0.0.40
codegen_flags: <defaults>
</compile_context>

<pallas_src>
import jax
import jax.numpy as jnp
from jax.experimental import pallas as pl
from jax.experimental.pallas import tpu as pltpu


def _make_dense_block_kernel(C_in, growth, num_layers, H, W):
    Hp, Wp = H + 2, W + 2
    HpWp = Hp * Wp
    VALID = (H - 1) * Wp + W          # flat span covering every valid output pixel
    C_total = C_in + num_layers * growth

    def kernel(x_ref, mask_ref, *args):
        # args = (w_0, b_0, ..., w_{L-1}, b_{L-1}, o_ref, stack_ref)
        o_ref = args[-2]              # (1, C_total, HpWp) f32 output block
        stack_ref = args[-1]          # (C_total, HpWp) bf16 VMEM feature stack

        # Zero both stacks (the conv halo must stay exactly 0), then drop the
        # pre-padded block input into the first C_in channels.
        o_ref[0, :, :] = jnp.zeros((C_total, HpWp), o_ref.dtype)
        stack_ref[...] = jnp.zeros((C_total, HpWp), stack_ref.dtype)
        x0 = x_ref[0, :, :]
        o_ref[0, :C_in, :] = x0
        stack_ref[:C_in, :] = x0.astype(stack_ref.dtype)

        mask = mask_ref[...]          # (1, VALID) f32: 1.0 where (p % Wp) < W

        for i in range(num_layers):
            cin_i = C_in + i * growth
            w_ref = args[2 * i]       # (9, growth, cin_i) bf16, tap-major, transposed
            b_ref = args[2 * i + 1]   # (growth, 1) f32

            # Bias-initialised f32 accumulator.  3x3 conv == 9 lane-shifted
            # matmuls: tap (kh, kw) is a flat shift of kh*Wp + kw in the
            # padded, flattened spatial axis.
            acc = jnp.broadcast_to(b_ref[...], (growth, VALID))
            for kh in range(3):
                for kw in range(3):
                    s = kh * Wp + kw
                    xs = stack_ref[:cin_i, s:s + VALID]      # bf16, no recast
                    acc = acc + jnp.dot(w_ref[kh * 3 + kw], xs,
                                        preferred_element_type=jnp.float32)

            acc = jnp.maximum(acc, 0.0) * mask               # ReLU + kill pad cols

            # Scatter this layer's channels back into the padded stack at
            # spatial offset (+1, +1)  ==  flat offset Wp + 1.
            lo, hi = Wp + 1, Wp + 1 + VALID
            o_ref[0, cin_i:cin_i + growth, lo:hi] = acc.astype(o_ref.dtype)
            stack_ref[cin_i:cin_i + growth, lo:hi] = acc.astype(stack_ref.dtype)

    return kernel


def _dense_block_forward(x_nchw, params):
    N, C_in, H, W = x_nchw.shape
    num_layers = len(params)
    growth = params[0][0].shape[-1]
    C_total = C_in + num_layers * growth
    Hp, Wp = H + 2, W + 2
    HpWp = Hp * Wp
    VALID = (H - 1) * Wp + W

    # Single pad of the block input; channel-major with spatial flattened on lanes.
    xp = jnp.pad(x_nchw, ((0, 0), (0, 0), (1, 1), (1, 1))).reshape(N, C_in, HpWp)

    # Lane-validity mask (precomputed outside the kernel: no in-kernel int mod).
    col = jnp.arange(VALID, dtype=jnp.int32) % Wp
    valid_mask = (col < W).astype(jnp.float32).reshape(1, VALID)

    kernel = _make_dense_block_kernel(C_in, growth, num_layers, H, W)

    flat_args = [xp, valid_mask]
    in_specs = [
        pl.BlockSpec((1, C_in, HpWp), lambda n: (n, 0, 0)),
        pl.BlockSpec((1, VALID), lambda n: (0, 0)),
    ]
    for i, (w, b) in enumerate(params):
        cin_i = C_in + i * growth
        # (3,3,cin,growth) HWIO  ->  (9, growth, cin): tap-major, pre-transposed
        # so each tap matmul is (growth, cin) @ (cin, VALID) with spatial on lanes.
        wt = jnp.transpose(w, (0, 1, 3, 2)).reshape(9, growth, cin_i)
        flat_args.append(wt.astype(jnp.bfloat16))
        flat_args.append(b.reshape(growth, 1).astype(jnp.float32))
        in_specs.append(pl.BlockSpec((9, growth, cin_i), lambda n: (0, 0, 0)))
        in_specs.append(pl.BlockSpec((growth, 1), lambda n: (0, 0)))

    out_pad = pl.pallas_call(
        kernel,
        out_shape=jax.ShapeDtypeStruct((N, C_total, HpWp), x_nchw.dtype),
        grid=(N,),
        in_specs=in_specs,
        out_specs=pl.BlockSpec((1, C_total, HpWp), lambda n: (n, 0, 0)),
        scratch_shapes=[pltpu.VMEM((C_total, HpWp), jnp.bfloat16)],
        compiler_params=pltpu.CompilerParams(
            dimension_semantics=("parallel",)),
    )(*flat_args)

    # Crop the halo; channel-major layout means this is already NCHW.
    return out_pad.reshape(N, C_total, Hp, Wp)[:, :, 1:1 + H, 1:1 + W]


dense_block_forward = jax.jit(_dense_block_forward)


def init_dense_block_params(key, in_channels, growth, num_layers,
                            dtype=jnp.float32):
    """Deterministic synthetic parameters (no checkpoint load)."""
    params = []
    for i in range(num_layers):
        cin_i = in_channels + i * growth
        key, kw, kb = jax.random.split(key, 3)
        fan_in = 3 * 3 * cin_i
        w = (jax.random.normal(kw, (3, 3, cin_i, growth), dtype)
             * (2.0 / fan_in) ** 0.5)
        bvec = jax.random.normal(kb, (growth,), dtype) * 0.01
        params.append((w, bvec))
    return params


def dense_block_reference(x_nchw, params):
    """Pure-JAX/XLA reference (f32) for correctness checking."""
    feats = x_nchw
    outs = [x_nchw]
    for (w, b) in params:
        y = jax.lax.conv_general_dilated(
            feats, w, window_strides=(1, 1), padding=((1, 1), (1, 1)),
            dimension_numbers=('NCHW', 'HWIO', 'NCHW'),
            precision=jax.lax.Precision.HIGHEST)
        y = jax.nn.relu(y + b.reshape(1, -1, 1, 1))
        outs.append(y)
        feats = jnp.concatenate([feats, y], axis=1)
    return jnp.concatenate(outs, axis=1)


if __name__ == "__main__":
    # Small shapes: batch=2, in_channels=4, spatial=16x16, growth=8, 3 layers.
    N, C_in, H, W = 2, 4, 16, 16
    growth, num_layers = 8, 3

    key = jax.random.PRNGKey(0)
    kx, kp = jax.random.split(key)
    x = jax.random.normal(kx, (N, C_in, H, W), jnp.float32)
    params = init_dense_block_params(kp, C_in, growth, num_layers)

    out = jax.block_until_ready(dense_block_forward(x, params))

    expected_c = C_in + num_layers * growth
    assert out.shape == (N, expected_c, H, W), out.shape
    assert bool(jnp.all(jnp.isfinite(out)))

    ref = dense_block_reference(x, params)
    err = float(jnp.max(jnp.abs(out - ref)))
    assert err < 1e-1, f"max abs error vs conv reference: {err}"
    print("KERNEL_OK")
</pallas_src>

<mosaic_0001>
module attributes {stable_mosaic.version = 11 : i64} {
  func.func @kernel(%arg0: i32, %arg1: memref<1x4x324xf32, #tpu.memory_space<vmem>>, %arg2: memref<1x286xf32, #tpu.memory_space<vmem>>, %arg3: memref<9x8x4xbf16, #tpu.memory_space<vmem>>, %arg4: memref<8x1xf32, #tpu.memory_space<vmem>>, %arg5: memref<9x8x12xbf16, #tpu.memory_space<vmem>>, %arg6: memref<8x1xf32, #tpu.memory_space<vmem>>, %arg7: memref<9x8x20xbf16, #tpu.memory_space<vmem>>, %arg8: memref<8x1xf32, #tpu.memory_space<vmem>>, %arg9: memref<1x28x324xf32, #tpu.memory_space<vmem>>, %arg10: memref<28x324xbf16, #tpu.memory_space<vmem>>) attributes {dimension_semantics = [#tpu.dimension_semantics<parallel>], iteration_bounds = array<i64: 2>, scalar_prefetch = 0 : i64, scratch_operands = 1 : i64, tpu.core_type = #tpu.core_type<tc>, window_params = [{transform_indices = @transform_0, window_bounds = array<i64: 1, 4, 324>}, {pipeline_mode = #tpu.pipeline_mode<synchronous>, transform_indices = @transform_1, window_bounds = array<i64: 1, 286>}, {pipeline_mode = #tpu.pipeline_mode<synchronous>, transform_indices = @transform_2, window_bounds = array<i64: 9, 8, 4>}, {pipeline_mode = #tpu.pipeline_mode<synchronous>, transform_indices = @transform_3, window_bounds = array<i64: 8, 1>}, {pipeline_mode = #tpu.pipeline_mode<synchronous>, transform_indices = @transform_4, window_bounds = array<i64: 9, 8, 12>}, {pipeline_mode = #tpu.pipeline_mode<synchronous>, transform_indices = @transform_5, window_bounds = array<i64: 8, 1>}, {pipeline_mode = #tpu.pipeline_mode<synchronous>, transform_indices = @transform_6, window_bounds = array<i64: 9, 8, 20>}, {pipeline_mode = #tpu.pipeline_mode<synchronous>, transform_indices = @transform_7, window_bounds = array<i64: 8, 1>}, {transform_indices = @transform_8, window_bounds = array<i64: 1, 28, 324>}]} {
    %cst = arith.constant 0.000000e+00 : f32
    %0 = vector.broadcast %cst : f32 to vector<28x324xf32>
    %c0 = arith.constant 0 : index
    %c0_0 = arith.constant 0 : index
    %c0_1 = arith.constant 0 : index
    %1 = vector.load %arg9[%c0, %c0_0, %c0_1] : memref<1x28x324xf32, #tpu.memory_space<vmem>>, vector<1x28x324xf32>
    %2 = vector.shape_cast %1 : vector<1x28x324xf32> to vector<28x324xf32>
    %3 = vector.shape_cast %0 : vector<28x324xf32> to vector<1x28x324xf32>
    tpu.vector_store %arg9[%c0, %c0_0, %c0_1], %3 {strides = array<i32>} : memref<1x28x324xf32, #tpu.memory_space<vmem>>, vector<1x28x324xf32>,
    %cst_2 = arith.constant 0.000000e+00 : bf16
    %4 = vector.broadcast %cst_2 : bf16 to vector<28x324xbf16>
    %c0_3 = arith.constant 0 : index
    %c0_4 = arith.constant 0 : index
    %5 = vector.load %arg10[%c0_3, %c0_4] : memref<28x324xbf16, #tpu.memory_space<vmem>>, vector<28x324xbf16>
    tpu.vector_store %arg10[%c0_3, %c0_4], %4 {strides = array<i32>} : memref<28x324xbf16, #tpu.memory_space<vmem>>, vector<28x324xbf16>,
    %c0_5 = arith.constant 0 : index
    %c0_6 = arith.constant 0 : index
    %c0_7 = arith.constant 0 : index
    %6 = vector.load %arg1[%c0_5, %c0_6, %c0_7] : memref<1x4x324xf32, #tpu.memory_space<vmem>>, vector<1x4x324xf32>
    %7 = vector.shape_cast %6 : vector<1x4x324xf32> to vector<4x324xf32>
    %c0_8 = arith.constant 0 : index
    %c0_9 = arith.constant 0 : index
    %c0_10 = arith.constant 0 : index
    %8 = vector.load %arg9[%c0_8, %c0_9, %c0_10] : memref<1x28x324xf32, #tpu.memory_space<vmem>>, vector<1x4x324xf32>
    %9 = vector.shape_cast %8 : vector<1x4x324xf32> to vector<4x324xf32>
    %10 = vector.shape_cast %7 : vector<4x324xf32> to vector<1x4x324xf32>
    tpu.vector_store %arg9[%c0_8, %c0_9, %c0_10], %10 {strides = array<i32>} : memref<1x28x324xf32, #tpu.memory_space<vmem>>, vector<1x4x324xf32>,
    %11 = arith.truncf %7 : vector<4x324xf32> to vector<4x324xbf16>
    %c0_11 = arith.constant 0 : index
    %c0_12 = arith.constant 0 : index
    %12 = vector.load %arg10[%c0_11, %c0_12] : memref<28x324xbf16, #tpu.memory_space<vmem>>, vector<4x324xbf16>
    tpu.vector_store %arg10[%c0_11, %c0_12], %11 {strides = array<i32>} : memref<28x324xbf16, #tpu.memory_space<vmem>>, vector<4x324xbf16>,
    %c0_13 = arith.constant 0 : index
    %c0_14 = arith.constant 0 : index
    %13 = vector.load %arg2[%c0_13, %c0_14] : memref<1x286xf32, #tpu.memory_space<vmem>>, vector<1x286xf32>
    %c0_15 = arith.constant 0 : index
    %c0_16 = arith.constant 0 : index
    %14 = vector.load %arg4[%c0_15, %c0_16] : memref<8x1xf32, #tpu.memory_space<vmem>>, vector<8x1xf32>
    %15 = vector.shape_cast %14 : vector<8x1xf32> to vector<8x1xf32>
    %16 = vector.broadcast %15 : vector<8x1xf32> to vector<8x286xf32>
    %c0_17 = arith.constant 0 : index
    %c0_18 = arith.constant 0 : index
    %17 = vector.load %arg10[%c0_17, %c0_18] : memref<28x324xbf16, #tpu.memory_space<vmem>>, vector<4x286xbf16>
    %c0_19 = arith.constant 0 : index
    %c0_20 = arith.constant 0 : index
    %c0_21 = arith.constant 0 : index
    %18 = vector.load %arg3[%c0_19, %c0_20, %c0_21] : memref<9x8x4xbf16, #tpu.memory_space<vmem>>, vector<1x8x4xbf16>
    %19 = vector.shape_cast %18 : vector<1x8x4xbf16> to vector<8x4xbf16>
    %cst_22 = arith.constant dense<0.000000e+00> : vector<8x286xf32>
    %20 = tpu.matmul %19, %17, %cst_22 {dimension_numbers = #tpu.dot_dimension_numbers<[1], [0], [0], [1], [0, 0, 1, 1], [], []>} : vector<8x4xbf16>, vector<4x286xbf16>, vector<8x286xf32> -> vector<8x286xf32>
    %21 = arith.addf %16, %20 : vector<8x286xf32>
    %c0_23 = arith.constant 0 : index
    %c1 = arith.constant 1 : index
    %22 = vector.load %arg10[%c0_23, %c1] : memref<28x324xbf16, #tpu.memory_space<vmem>>, vector<4x286xbf16>
    %c1_24 = arith.constant 1 : index
    %c0_25 = arith.constant 0 : index
    %c0_26 = arith.constant 0 : index
    %23 = vector.load %arg3[%c1_24, %c0_25, %c0_26] : memref<9x8x4xbf16, #tpu.memory_space<vmem>>, vector<1x8x4xbf16>
    %24 = vector.shape_cast %23 : vector<1x8x4xbf16> to vector<8x4xbf16>
    %cst_27 = arith.constant dense<0.000000e+00> : vector<8x286xf32>
    %25 = tpu.matmul %24, %22, %cst_27 {dimension_numbers = #tpu.dot_dimension_numbers<[1], [0], [0], [1], [0, 0, 1, 1], [], []>} : vector<8x4xbf16>, vector<4x286xbf16>, vector<8x286xf32> -> vector<8x286xf32>
    %26 = arith.addf %21, %25 : vector<8x286xf32>
    %c0_28 = arith.constant 0 : index
    %c2 = arith.constant 2 : index
    %27 = vector.load %arg10[%c0_28, %c2] : memref<28x324xbf16, #tpu.memory_space<vmem>>, vector<4x286xbf16>
    %c2_29 = arith.constant 2 : index
    %c0_30 = arith.constant 0 : index
    %c0_31 = arith.constant 0 : index
    %28 = vector.load %arg3[%c2_29, %c0_30, %c0_31] : memref<9x8x4xbf16, #tpu.memory_space<vmem>>, vector<1x8x4xbf16>
    %29 = vector.shape_cast %28 : vector<1x8x4xbf16> to vector<8x4xbf16>
    %cst_32 = arith.constant dense<0.000000e+00> : vector<8x286xf32>
    %30 = tpu.matmul %29, %27, %cst_32 {dimension_numbers = #tpu.dot_dimension_numbers<[1], [0], [0], [1], [0, 0, 1, 1], [], []>} : vector<8x4xbf16>, vector<4x286xbf16>, vector<8x286xf32> -> vector<8x286xf32>
    %31 = arith.addf %26, %30 : vector<8x286xf32>
    %c0_33 = arith.constant 0 : index
    %c18 = arith.constant 18 : index
    %32 = vector.load %arg10[%c0_33, %c18] : memref<28x324xbf16, #tpu.memory_space<vmem>>, vector<4x286xbf16>
    %c3 = arith.constant 3 : index
    %c0_34 = arith.constant 0 : index
    %c0_35 = arith.constant 0 : index
    %33 = vector.load %arg3[%c3, %c0_34, %c0_35] : memref<9x8x4xbf16, #tpu.memory_space<vmem>>, vector<1x8x4xbf16>
    %34 = vector.shape_cast %33 : vector<1x8x4xbf16> to vector<8x4xbf16>
    %cst_36 = arith.constant dense<0.000000e+00> : vector<8x286xf32>
    %35 = tpu.matmul %34, %32, %cst_36 {dimension_numbers = #tpu.dot_dimension_numbers<[1], [0], [0], [1], [0, 0, 1, 1], [], []>} : vector<8x4xbf16>, vector<4x286xbf16>, vector<8x286xf32> -> vector<8x286xf32>
    %36 = arith.addf %31, %35 : vector<8x286xf32>
    %c0_37 = arith.constant 0 : index
    %c19 = arith.constant 19 : index
    %37 = vector.load %arg10[%c0_37, %c19] : memref<28x324xbf16, #tpu.memory_space<vmem>>, vector<4x286xbf16>
    %c4 = arith.constant 4 : index
    %c0_38 = arith.constant 0 : index
    %c0_39 = arith.constant 0 : index
    %38 = vector.load %arg3[%c4, %c0_38, %c0_39] : memref<9x8x4xbf16, #tpu.memory_space<vmem>>, vector<1x8x4xbf16>
    %39 = vector.shape_cast %38 : vector<1x8x4xbf16> to vector<8x4xbf16>
    %cst_40 = arith.constant dense<0.000000e+00> : vector<8x286xf32>
    %40 = tpu.matmul %39, %37, %cst_40 {dimension_numbers = #tpu.dot_dimension_numbers<[1], [0], [0], [1], [0, 0, 1, 1], [], []>} : vector<8x4xbf16>, vector<4x286xbf16>, vector<8x286xf32> -> vector<8x286xf32>
    %41 = arith.addf %36, %40 : vector<8x286xf32>
    %c0_41 = arith.constant 0 : index
    %c20 = arith.constant 20 : index
    %42 = vector.load %arg10[%c0_41, %c20] : memref<28x324xbf16, #tpu.memory_space<vmem>>, vector<4x286xbf16>
    %c5 = arith.constant 5 : index
    %c0_42 = arith.constant 0 : index
    %c0_43 = arith.constant 0 : index
    %43 = vector.load %arg3[%c5, %c0_42, %c0_43] : memref<9x8x4xbf16, #tpu.memory_space<vmem>>, vector<1x8x4xbf16>
    %44 = vector.shape_cast %43 : vector<1x8x4xbf16> to vector<8x4xbf16>
    %cst_44 = arith.constant dense<0.000000e+00> : vector<8x286xf32>
    %45 = tpu.matmul %44, %42, %cst_44 {dimension_numbers = #tpu.dot_dimension_numbers<[1], [0], [0], [1], [0, 0, 1, 1], [], []>} : vector<8x4xbf16>, vector<4x286xbf16>, vector<8x286xf32> -> vector<8x286xf32>
    %46 = arith.addf %41, %45 : vector<8x286xf32>
    %c0_45 = arith.constant 0 : index
    %c36 = arith.constant 36 : index
    %47 = vector.load %arg10[%c0_45, %c36] : memref<28x324xbf16, #tpu.memory_space<vmem>>, vector<4x286xbf16>
    %c6 = arith.constant 6 : index
    %c0_46 = arith.constant 0 : index
    %c0_47 = arith.constant 0 : index
    %48 = vector.load %arg3[%c6, %c0_46, %c0_47] : memref<9x8x4xbf16, #tpu.memory_space<vmem>>, vector<1x8x4xbf16>
    %49 = vector.shape_cast %48 : vector<1x8x4xbf16> to vector<8x4xbf16>
    %cst_48 = arith.constant dense<0.000000e+00> : vector<8x286xf32>
    %50 = tpu.matmul %49, %47, %cst_48 {dimension_numbers = #tpu.dot_dimension_numbers<[1], [0], [0], [1], [0, 0, 1, 1], [], []>} : vector<8x4xbf16>, vector<4x286xbf16>, vector<8x286xf32> -> vector<8x286xf32>
    %51 = arith.addf %46, %50 : vector<8x286xf32>
    %c0_49 = arith.constant 0 : index
    %c37 = arith.constant 37 : index
    %52 = vector.load %arg10[%c0_49, %c37] : memref<28x324xbf16, #tpu.memory_space<vmem>>, vector<4x286xbf16>
    %c7 = arith.constant 7 : index
    %c0_50 = arith.constant 0 : index
    %c0_51 = arith.constant 0 : index
    %53 = vector.load %arg3[%c7, %c0_50, %c0_51] : memref<9x8x4xbf16, #tpu.memory_space<vmem>>, vector<1x8x4xbf16>
    %54 = vector.shape_cast %53 : vector<1x8x4xbf16> to vector<8x4xbf16>
    %cst_52 = arith.constant dense<0.000000e+00> : vector<8x286xf32>
    %55 = tpu.matmul %54, %52, %cst_52 {dimension_numbers = #tpu.dot_dimension_numbers<[1], [0], [0], [1], [0, 0, 1, 1], [], []>} : vector<8x4xbf16>, vector<4x286xbf16>, vector<8x286xf32> -> vector<8x286xf32>
    %56 = arith.addf %51, %55 : vector<8x286xf32>
    %c0_53 = arith.constant 0 : index
    %c38 = arith.constant 38 : index
    %57 = vector.load %arg10[%c0_53, %c38] : memref<28x324xbf16, #tpu.memory_space<vmem>>, vector<4x286xbf16>
    %c8 = arith.constant 8 : index
    %c0_54 = arith.constant 0 : index
    %c0_55 = arith.constant 0 : index
    %58 = vector.load %arg3[%c8, %c0_54, %c0_55] : memref<9x8x4xbf16, #tpu.memory_space<vmem>>, vector<1x8x4xbf16>
    %59 = vector.shape_cast %58 : vector<1x8x4xbf16> to vector<8x4xbf16>
    %cst_56 = arith.constant dense<0.000000e+00> : vector<8x286xf32>
    %60 = tpu.matmul %59, %57, %cst_56 {dimension_numbers = #tpu.dot_dimension_numbers<[1], [0], [0], [1], [0, 0, 1, 1], [], []>} : vector<8x4xbf16>, vector<4x286xbf16>, vector<8x286xf32> -> vector<8x286xf32>
    %61 = arith.addf %56, %60 : vector<8x286xf32>
    %cst_57 = arith.constant 0.000000e+00 : f32
    %62 = vector.broadcast %cst_57 : f32 to vector<8x286xf32>
    %63 = arith.maximumf %61, %62 : vector<8x286xf32>
    %64 = vector.broadcast %13 : vector<1x286xf32> to vector<8x286xf32>
    %65 = arith.mulf %63, %64 : vector<8x286xf32>
    %c0_58 = arith.constant 0 : index
    %c4_59 = arith.constant 4 : index
    %c19_60 = arith.constant 19 : index
    %66 = vector.load %arg9[%c0_58, %c4_59, %c19_60] : memref<1x28x324xf32, #tpu.memory_space<vmem>>, vector<1x8x286xf32>
    %67 = vector.shape_cast %66 : vector<1x8x286xf32> to vector<8x286xf32>
    %68 = vector.shape_cast %65 : vector<8x286xf32> to vector<1x8x286xf32>
    tpu.vector_store %arg9[%c0_58, %c4_59, %c19_60], %68 {strides = array<i32>} : memref<1x28x324xf32, #tpu.memory_space<vmem>>, vector<1x8x286xf32>,
    %69 = arith.truncf %65 : vector<8x286xf32> to vector<8x286xbf16>
    %c4_61 = arith.constant 4 : index
    %c19_62 = arith.constant 19 : index
    %70 = vector.load %arg10[%c4_61, %c19_62] : memref<28x324xbf16, #tpu.memory_space<vmem>>, vector<8x286xbf16>
    tpu.vector_store %arg10[%c4_61, %c19_62], %69 {strides = array<i32>} : memref<28x324xbf16, #tpu.memory_space<vmem>>, vector<8x286xbf16>,
    %c0_63 = arith.constant 0 : index
    %c0_64 = arith.constant 0 : index
    %71 = vector.load %arg6[%c0_63, %c0_64] : memref<8x1xf32, #tpu.memory_space<vmem>>, vector<8x1xf32>
    %72 = vector.shape_cast %71 : vector<8x1xf32> to vector<8x1xf32>
    %73 = vector.broadcast %72 : vector<8x1xf32> to vector<8x286xf32>
    %c0_65 = arith.constant 0 : index
    %c0_66 = arith.constant 0 : index
    %74 = vector.load %arg10[%c0_65, %c0_66] : memref<28x324xbf16, #tpu.memory_space<vmem>>, vector<12x286xbf16>
    %c0_67 = arith.constant 0 : index
    %c0_68 = arith.constant 0 : index
    %c0_69 = arith.constant 0 : index
    %75 = vector.load %arg5[%c0_67, %c0_68, %c0_69] : memref<9x8x12xbf16, #tpu.memory_space<vmem>>, vector<1x8x12xbf16>
    %76 = vector.shape_cast %75 : vector<1x8x12xbf16> to vector<8x12xbf16>
    %cst_70 = arith.constant dense<0.000000e+00> : vector<8x286xf32>
    %77 = tpu.matmul %76, %74, %cst_70 {dimension_numbers = #tpu.dot_dimension_numbers<[1], [0], [0], [1], [0, 0, 1, 1], [], []>} : vector<8x12xbf16>, vector<12x286xbf16>, vector<8x286xf32> -> vector<8x286xf32>
    %78 = arith.addf %73, %77 : vector<8x286xf32>
    %c0_71 = arith.constant 0 : index
    %c1_72 = arith.constant 1 : index
    %79 = vector.load %arg10[%c0_71, %c1_72] : memref<28x324xbf16, #tpu.memory_space<vmem>>, vector<12x286xbf16>
    %c1_73 = arith.constant 1 : index
    %c0_74 = arith.constant 0 : index
    %c0_75 = arith.constant 0 : index
    %80 = vector.load %arg5[%c1_73, %c0_74, %c0_75] : memref<9x8x12xbf16, #tpu.memory_space<vmem>>, vector<1x8x12xbf16>
    %81 = vector.shape_cast %80 : vector<1x8x12xbf16> to vector<8x12xbf16>
    %cst_76 = arith.constant dense<0.000000e+00> : vector<8x286xf32>
    %82 = tpu.matmul %81, %79, %cst_76 {dimension_numbers = #tpu.dot_dimension_numbers<[1], [0], [0], [1], [0, 0, 1, 1], [], []>} : vector<8x12xbf16>, vector<12x286xbf16>, vector<8x286xf32> -> vector<8x286xf32>
    %83 = arith.addf %78, %82 : vector<8x286xf32>
    %c0_77 = arith.constant 0 : index
    %c2_78 = arith.constant 2 : index
    %84 = vector.load %arg10[%c0_77, %c2_78] : memref<28x324xbf16, #tpu.memory_space<vmem>>, vector<12x286xbf16>
    %c2_79 = arith.constant 2 : index
    %c0_80 = arith.constant 0 : index
    %c0_81 = arith.constant 0 : index
    %85 = vector.load %arg5[%c2_79, %c0_80, %c0_81] : memref<9x8x12xbf16, #tpu.memory_space<vmem>>, vector<1x8x12xbf16>
    %86 = vector.shape_cast %85 : vector<1x8x12xbf16> to vector<8x12xbf16>
    %cst_82 = arith.constant dense<0.000000e+00> : vector<8x286xf32>
    %87 = tpu.matmul %86, %84, %cst_82 {dimension_numbers = #tpu.dot_dimension_numbers<[1], [0], [0], [1], [0, 0, 1, 1], [], []>} : vector<8x12xbf16>, vector<12x286xbf16>, vector<8x286xf32> -> vector<8x286xf32>
    %88 = arith.addf %83, %87 : vector<8x286xf32>
    %c0_83 = arith.constant 0 : index
    %c18_84 = arith.constant 18 : index
    %89 = vector.load %arg10[%c0_83, %c18_84] : memref<28x324xbf16, #tpu.memory_space<vmem>>, vector<12x286xbf16>
    %c3_85 = arith.constant 3 : index
    %c0_86 = arith.constant 0 : index
    %c0_87 = arith.constant 0 : index
    %90 = vector.load %arg5[%c3_85, %c0_86, %c0_87] : memref<9x8x12xbf16, #tpu.memory_space<vmem>>, vector<1x8x12xbf16>
    %91 = vector.shape_cast %90 : vector<1x8x12xbf16> to vector<8x12xbf16>
    %cst_88 = arith.constant dense<0.000000e+00> : vector<8x286xf32>
    %92 = tpu.matmul %91, %89, %cst_88 {dimension_numbers = #tpu.dot_dimension_numbers<[1], [0], [0], [1], [0, 0, 1, 1], [], []>} : vector<8x12xbf16>, vector<12x286xbf16>, vector<8x286xf32> -> vector<8x286xf32>
    %93 = arith.addf %88, %92 : vector<8x286xf32>
    %c0_89 = arith.constant 0 : index
    %c19_90 = arith.constant 19 : index
    %94 = vector.load %arg10[%c0_89, %c19_90] : memref<28x324xbf16, #tpu.memory_space<vmem>>, vector<12x286xbf16>
    %c4_91 = arith.constant 4 : index
    %c0_92 = arith.constant 0 : index
    %c0_93 = arith.constant 0 : index
    %95 = vector.load %arg5[%c4_91, %c0_92, %c0_93] : memref<9x8x12xbf16, #tpu.memory_space<vmem>>, vector<1x8x12xbf16>
    %96 = vector.shape_cast %95 : vector<1x8x12xbf16> to vector<8x12xbf16>
    %cst_94 = arith.constant dense<0.000000e+00> : vector<8x286xf32>
    %97 = tpu.matmul %96, %94, %cst_94 {dimension_numbers = #tpu.dot_dimension_numbers<[1], [0], [0], [1], [0, 0, 1, 1], [], []>} : vector<8x12xbf16>, vector<12x286xbf16>, vector<8x286xf32> -> vector<8x286xf32>
    %98 = arith.addf %93, %97 : vector<8x286xf32>
    %c0_95 = arith.constant 0 : index
    %c20_96 = arith.constant 20 : index
    %99 = vector.load %arg10[%c0_95, %c20_96] : memref<28x324xbf16, #tpu.memory_space<vmem>>, vector<12x286xbf16>
    %c5_97 = arith.constant 5 : index
    %c0_98 = arith.constant 0 : index
    %c0_99 = arith.constant 0 : index
    %100 = vector.load %arg5[%c5_97, %c0_98, %c0_99] : memref<9x8x12xbf16, #tpu.memory_space<vmem>>, vector<1x8x12xbf16>
    %101 = vector.shape_cast %100 : vector<1x8x12xbf16> to vector<8x12xbf16>
    %cst_100 = arith.constant dense<0.000000e+00> : vector<8x286xf32>
    %102 = tpu.matmul %101, %99, %cst_100 {dimension_numbers = #tpu.dot_dimension_numbers<[1], [0], [0], [1], [0, 0, 1, 1], [], []>} : vector<8x12xbf16>, vector<12x286xbf16>, vector<8x286xf32> -> vector<8x286xf32>
    %103 = arith.addf %98, %102 : vector<8x286xf32>
    %c0_101 = arith.constant 0 : index
    %c36_102 = arith.constant 36 : index
    %104 = vector.load %arg10[%c0_101, %c36_102] : memref<28x324xbf16, #tpu.memory_space<vmem>>, vector<12x286xbf16>
    %c6_103 = arith.constant 6 : index
    %c0_104 = arith.constant 0 : index
    %c0_105 = arith.constant 0 : index
    %105 = vector.load %arg5[%c6_103, %c0_104, %c0_105] : memref<9x8x12xbf16, #tpu.memory_space<vmem>>, vector<1x8x12xbf16>
    %106 = vector.shape_cast %105 : vector<1x8x12xbf16> to vector<8x12xbf16>
    %cst_106 = arith.constant dense<0.000000e+00> : vector<8x286xf32>
    %107 = tpu.matmul %106, %104, %cst_106 {dimension_numbers = #tpu.dot_dimension_numbers<[1], [0], [0], [1], [0, 0, 1, 1], [], []>} : vector<8x12xbf16>, vector<12x286xbf16>, vector<8x286xf32> -> vector<8x286xf32>
    %108 = arith.addf %103, %107 : vector<8x286xf32>
    %c0_107 = arith.constant 0 : index
    %c37_108 = arith.constant 37 : index
    %109 = vector.load %arg10[%c0_107, %c37_108] : memref<28x324xbf16, #tpu.memory_space<vmem>>, vector<12x286xbf16>
    %c7_109 = arith.constant 7 : index
    %c0_110 = arith.constant 0 : index
    %c0_111 = arith.constant 0 : index
    %110 = vector.load %arg5[%c7_109, %c0_110, %c0_111] : memref<9x8x12xbf16, #tpu.memory_space<vmem>>, vector<1x8x12xbf16>
    %111 = vector.shape_cast %110 : vector<1x8x12xbf16> to vector<8x12xbf16>
    %cst_112 = arith.constant dense<0.000000e+00> : vector<8x286xf32>
    %112 = tpu.matmul %111, %109, %cst_112 {dimension_numbers = #tpu.dot_dimension_numbers<[1], [0], [0], [1], [0, 0, 1, 1], [], []>} : vector<8x12xbf16>, vector<12x286xbf16>, vector<8x286xf32> -> vector<8x286xf32>
    %113 = arith.addf %108, %112 : vector<8x286xf32>
    %c0_113 = arith.constant 0 : index
    %c38_114 = arith.constant 38 : index
    %114 = vector.load %arg10[%c0_113, %c38_114] : memref<28x324xbf16, #tpu.memory_space<vmem>>, vector<12x286xbf16>
    %c8_115 = arith.constant 8 : index
    %c0_116 = arith.constant 0 : index
    %c0_117 = arith.constant 0 : index
    %115 = vector.load %arg5[%c8_115, %c0_116, %c0_117] : memref<9x8x12xbf16, #tpu.memory_space<vmem>>, vector<1x8x12xbf16>
    %116 = vector.shape_cast %115 : vector<1x8x12xbf16> to vector<8x12xbf16>
    %cst_118 = arith.constant dense<0.000000e+00> : vector<8x286xf32>
    %117 = tpu.matmul %116, %114, %cst_118 {dimension_numbers = #tpu.dot_dimension_numbers<[1], [0], [0], [1], [0, 0, 1, 1], [], []>} : vector<8x12xbf16>, vector<12x286xbf16>, vector<8x286xf32> -> vector<8x286xf32>
    %118 = arith.addf %113, %117 : vector<8x286xf32>
    %cst_119 = arith.constant 0.000000e+00 : f32
    %119 = vector.broadcast %cst_119 : f32 to vector<8x286xf32>
    %120 = arith.maximumf %118, %119 : vector<8x286xf32>
    %121 = vector.broadcast %13 : vector<1x286xf32> to vector<8x286xf32>
    %122 = arith.mulf %120, %121 : vector<8x286xf32>
    %c0_120 = arith.constant 0 : index
    %c12 = arith.constant 12 : index
    %c19_121 = arith.constant 19 : index
    %123 = vector.load %arg9[%c0_120, %c12, %c19_121] : memref<1x28x324xf32, #tpu.memory_space<vmem>>, vector<1x8x286xf32>
    %124 = vector.shape_cast %123 : vector<1x8x286xf32> to vector<8x286xf32>
    %125 = vector.shape_cast %122 : vector<8x286xf32> to vector<1x8x286xf32>
    tpu.vector_store %arg9[%c0_120, %c12, %c19_121], %125 {strides = array<i32>} : memref<1x28x324xf32, #tpu.memory_space<vmem>>, vector<1x8x286xf32>,
    %126 = arith.truncf %122 : vector<8x286xf32> to vector<8x286xbf16>
    %c12_122 = arith.constant 12 : index
    %c19_123 = arith.constant 19 : index
    %127 = vector.load %arg10[%c12_122, %c19_123] : memref<28x324xbf16, #tpu.memory_space<vmem>>, vector<8x286xbf16>
    tpu.vector_store %arg10[%c12_122, %c19_123], %126 {strides = array<i32>} : memref<28x324xbf16, #tpu.memory_space<vmem>>, vector<8x286xbf16>,
    %c0_124 = arith.constant 0 : index
    %c0_125 = arith.constant 0 : index
    %128 = vector.load %arg8[%c0_124, %c0_125] : memref<8x1xf32, #tpu.memory_space<vmem>>, vector<8x1xf32>
    %129 = vector.shape_cast %128 : vector<8x1xf32> to vector<8x1xf32>
    %130 = vector.broadcast %129 : vector<8x1xf32> to vector<8x286xf32>
    %c0_126 = arith.constant 0 : index
    %c0_127 = arith.constant 0 : index
    %131 = vector.load %arg10[%c0_126, %c0_127] : memref<28x324xbf16, #tpu.memory_space<vmem>>, vector<20x286xbf16>
    %c0_128 = arith.constant 0 : index
    %c0_129 = arith.constant 0 : index
    %c0_130 = arith.constant 0 : index
    %132 = vector.load %arg7[%c0_128, %c0_129, %c0_130] : memref<9x8x20xbf16, #tpu.memory_space<vmem>>, vector<1x8x20xbf16>
    %133 = vector.shape_cast %132 : vector<1x8x20xbf16> to vector<8x20xbf16>
    %cst_131 = arith.constant dense<0.000000e+00> : vector<8x286xf32>
    %134 = tpu.matmul %133, %131, %cst_131 {dimension_numbers = #tpu.dot_dimension_numbers<[1], [0], [0], [1], [0, 0, 1, 1], [], []>} : vector<8x20xbf16>, vector<20x286xbf16>, vector<8x286xf32> -> vector<8x286xf32>
    %135 = arith.addf %130, %134 : vector<8x286xf32>
    %c0_132 = arith.constant 0 : index
    %c1_133 = arith.constant 1 : index
    %136 = vector.load %arg10[%c0_132, %c1_133] : memref<28x324xbf16, #tpu.memory_space<vmem>>, vector<20x286xbf16>
    %c1_134 = arith.constant 1 : index
    %c0_135 = arith.constant 0 : index
    %c0_136 = arith.constant 0 : index
    %137 = vector.load %arg7[%c1_134, %c0_135, %c0_136] : memref<9x8x20xbf16, #tpu.memory_space<vmem>>, vector<1x8x20xbf16>
    %138 = vector.shape_cast %137 : vector<1x8x20xbf16> to vector<8x20xbf16>
    %cst_137 = arith.constant dense<0.000000e+00> : vector<8x286xf32>
    %139 = tpu.matmul %138, %136, %cst_137 {dimension_numbers = #tpu.dot_dimension_numbers<[1], [0], [0], [1], [0, 0, 1, 1], [], []>} : vector<8x20xbf16>, vector<20x286xbf16>, vector<8x286xf32> -> vector<8x286xf32>
    %140 = arith.addf %135, %139 : vector<8x286xf32>
    %c0_138 = arith.constant 0 : index
    %c2_139 = arith.constant 2 : index
    %141 = vector.load %arg10[%c0_138, %c2_139] : memref<28x324xbf16, #tpu.memory_space<vmem>>, vector<20x286xbf16>
    %c2_140 = arith.constant 2 : index
    %c0_141 = arith.constant 0 : index
    %c0_142 = arith.constant 0 : index
    %142 = vector.load %arg7[%c2_140, %c0_141, %c0_142] : memref<9x8x20xbf16, #tpu.memory_space<vmem>>, vector<1x8x20xbf16>
    %143 = vector.shape_cast %142 : vector<1x8x20xbf16> to vector<8x20xbf16>
    %cst_143 = arith.constant dense<0.000000e+00> : vector<8x286xf32>
    %144 = tpu.matmul %143, %141, %cst_143 {dimension_numbers = #tpu.dot_dimension_numbers<[1], [0], [0], [1], [0, 0, 1, 1], [], []>} : vector<8x20xbf16>, vector<20x286xbf16>, vector<8x286xf32> -> vector<8x286xf32>
    %145 = arith.addf %140, %144 : vector<8x286xf32>
    %c0_144 = arith.constant 0 : index
    %c18_145 = arith.constant 18 : index
    %146 = vector.load %arg10[%c0_144, %c18_145] : memref<28x324xbf16, #tpu.memory_space<vmem>>, vector<20x286xbf16>
    %c3_146 = arith.constant 3 : index
    %c0_147 = arith.constant 0 : index
    %c0_148 = arith.constant 0 : index
    %147 = vector.load %arg7[%c3_146, %c0_147, %c0_148] : memref<9x8x20xbf16, #tpu.memory_space<vmem>>, vector<1x8x20xbf16>
    %148 = vector.shape_cast %147 : vector<1x8x20xbf16> to vector<8x20xbf16>
    %cst_149 = arith.constant dense<0.000000e+00> : vector<8x286xf32>
    %149 = tpu.matmul %148, %146, %cst_149 {dimension_numbers = #tpu.dot_dimension_numbers<[1], [0], [0], [1], [0, 0, 1, 1], [], []>} : vector<8x20xbf16>, vector<20x286xbf16>, vector<8x286xf32> -> vector<8x286xf32>
    %150 = arith.addf %145, %149 : vector<8x286xf32>
    %c0_150 = arith.constant 0 : index
    %c19_151 = arith.constant 19 : index
    %151 = vector.load %arg10[%c0_150, %c19_151] : memref<28x324xbf16, #tpu.memory_space<vmem>>, vector<20x286xbf16>
    %c4_152 = arith.constant 4 : index
    %c0_153 = arith.constant 0 : index
    %c0_154 = arith.constant 0 : index
    %152 = vector.load %arg7[%c4_152, %c0_153, %c0_154] : memref<9x8x20xbf16, #tpu.memory_space<vmem>>, vector<1x8x20xbf16>
    %153 = vector.shape_cast %152 : vector<1x8x20xbf16> to vector<8x20xbf16>
    %cst_155 = arith.constant dense<0.000000e+00> : vector<8x286xf32>
    %154 = tpu.matmul %153, %151, %cst_155 {dimension_numbers = #tpu.dot_dimension_numbers<[1], [0], [0], [1], [0, 0, 1, 1], [], []>} : vector<8x20xbf16>, vector<20x286xbf16>, vector<8x286xf32> -> vector<8x286xf32>
    %155 = arith.addf %150, %154 : vector<8x286xf32>
    %c0_156 = arith.constant 0 : index
    %c20_157 = arith.constant 20 : index
    %156 = vector.load %arg10[%c0_156, %c20_157] : memref<28x324xbf16, #tpu.memory_space<vmem>>, vector<20x286xbf16>
    %c5_158 = arith.constant 5 : index
    %c0_159 = arith.constant 0 : index
    %c0_160 = arith.constant 0 : index
    %157 = vector.load %arg7[%c5_158, %c0_159, %c0_160] : memref<9x8x20xbf16, #tpu.memory_space<vmem>>, vector<1x8x20xbf16>
    %158 = vector.shape_cast %157 : vector<1x8x20xbf16> to vector<8x20xbf16>
    %cst_161 = arith.constant dense<0.000000e+00> : vector<8x286xf32>
    %159 = tpu.matmul %158, %156, %cst_161 {dimension_numbers = #tpu.dot_dimension_numbers<[1], [0], [0], [1], [0, 0, 1, 1], [], []>} : vector<8x20xbf16>, vector<20x286xbf16>, vector<8x286xf32> -> vector<8x286xf32>
    %160 = arith.addf %155, %159 : vector<8x286xf32>
    %c0_162 = arith.constant 0 : index
    %c36_163 = arith.constant 36 : index
    %161 = vector.load %arg10[%c0_162, %c36_163] : memref<28x324xbf16, #tpu.memory_space<vmem>>, vector<20x286xbf16>
    %c6_164 = arith.constant 6 : index
    %c0_165 = arith.constant 0 : index
    %c0_166 = arith.constant 0 : index
    %162 = vector.load %arg7[%c6_164, %c0_165, %c0_166] : memref<9x8x20xbf16, #tpu.memory_space<vmem>>, vector<1x8x20xbf16>
    %163 = vector.shape_cast %162 : vector<1x8x20xbf16> to vector<8x20xbf16>
    %cst_167 = arith.constant dense<0.000000e+00> : vector<8x286xf32>
    %164 = tpu.matmul %163, %161, %cst_167 {dimension_numbers = #tpu.dot_dimension_numbers<[1], [0], [0], [1], [0, 0, 1, 1], [], []>} : vector<8x20xbf16>, vector<20x286xbf16>, vector<8x286xf32> -> vector<8x286xf32>
    %165 = arith.addf %160, %164 : vector<8x286xf32>
    %c0_168 = arith.constant 0 : index
    %c37_169 = arith.constant 37 : index
    %166 = vector.load %arg10[%c0_168, %c37_169] : memref<28x324xbf16, #tpu.memory_space<vmem>>, vector<20x286xbf16>
    %c7_170 = arith.constant 7 : index
    %c0_171 = arith.constant 0 : index
    %c0_172 = arith.constant 0 : index
    %167 = vector.load %arg7[%c7_170, %c0_171, %c0_172] : memref<9x8x20xbf16, #tpu.memory_space<vmem>>, vector<1x8x20xbf16>
    %168 = vector.shape_cast %167 : vector<1x8x20xbf16> to vector<8x20xbf16>
    %cst_173 = arith.constant dense<0.000000e+00> : vector<8x286xf32>
    %169 = tpu.matmul %168, %166, %cst_173 {dimension_numbers = #tpu.dot_dimension_numbers<[1], [0], [0], [1], [0, 0, 1, 1], [], []>} : vector<8x20xbf16>, vector<20x286xbf16>, vector<8x286xf32> -> vector<8x286xf32>
    %170 = arith.addf %165, %169 : vector<8x286xf32>
    %c0_174 = arith.constant 0 : index
    %c38_175 = arith.constant 38 : index
    %171 = vector.load %arg10[%c0_174, %c38_175] : memref<28x324xbf16, #tpu.memory_space<vmem>>, vector<20x286xbf16>
    %c8_176 = arith.constant 8 : index
    %c0_177 = arith.constant 0 : index
    %c0_178 = arith.constant 0 : index
    %172 = vector.load %arg7[%c8_176, %c0_177, %c0_178] : memref<9x8x20xbf16, #tpu.memory_space<vmem>>, vector<1x8x20xbf16>
    %173 = vector.shape_cast %172 : vector<1x8x20xbf16> to vector<8x20xbf16>
    %cst_179 = arith.constant dense<0.000000e+00> : vector<8x286xf32>
    %174 = tpu.matmul %173, %171, %cst_179 {dimension_numbers = #tpu.dot_dimension_numbers<[1], [0], [0], [1], [0, 0, 1, 1], [], []>} : vector<8x20xbf16>, vector<20x286xbf16>, vector<8x286xf32> -> vector<8x286xf32>
    %175 = arith.addf %170, %174 : vector<8x286xf32>
    %cst_180 = arith.constant 0.000000e+00 : f32
    %176 = vector.broadcast %cst_180 : f32 to vector<8x286xf32>
    %177 = arith.maximumf %175, %176 : vector<8x286xf32>
    %178 = vector.broadcast %13 : vector<1x286xf32> to vector<8x286xf32>
    %179 = arith.mulf %177, %178 : vector<8x286xf32>
    %c0_181 = arith.constant 0 : index
    %c20_182 = arith.constant 20 : index
    %c19_183 = arith.constant 19 : index
    %180 = vector.load %arg9[%c0_181, %c20_182, %c19_183] : memref<1x28x324xf32, #tpu.memory_space<vmem>>, vector<1x8x286xf32>
    %181 = vector.shape_cast %180 : vector<1x8x286xf32> to vector<8x286xf32>
    %182 = vector.shape_cast %179 : vector<8x286xf32> to vector<1x8x286xf32>
    tpu.vector_store %arg9[%c0_181, %c20_182, %c19_183], %182 {strides = array<i32>} : memref<1x28x324xf32, #tpu.memory_space<vmem>>, vector<1x8x286xf32>,
    %183 = arith.truncf %179 : vector<8x286xf32> to vector<8x286xbf16>
    %c20_184 = arith.constant 20 : index
    %c19_185 = arith.constant 19 : index
    %184 = vector.load %arg10[%c20_184, %c19_185] : memref<28x324xbf16, #tpu.memory_space<vmem>>, vector<8x286xbf16>
    tpu.vector_store %arg10[%c20_184, %c19_185], %183 {strides = array<i32>} : memref<28x324xbf16, #tpu.memory_space<vmem>>, vector<8x286xbf16>,
    return
  }
  func.func @transform_0(%arg0: i32) -> (i32, i32, i32) {
    %c0_i32 = arith.constant 0 : i32
    %c0_i32_0 = arith.constant 0 : i32
    %c0_i32_1 = arith.constant 0 : i32
    return %arg0, %c0_i32, %c0_i32_0 : i32, i32, i32
  }
  func.func @transform_1(%arg0: i32) -> (i32, i32) {
    %c0_i32 = arith.constant 0 : i32
    %c0_i32_0 = arith.constant 0 : i32
    %c0_i32_1 = arith.constant 0 : i32
    return %c0_i32, %c0_i32_0 : i32, i32
  }
  func.func @transform_2(%arg0: i32) -> (i32, i32, i32) {
    %c0_i32 = arith.constant 0 : i32
    %c0_i32_0 = arith.constant 0 : i32
    %c0_i32_1 = arith.constant 0 : i32
    %c0_i32_2 = arith.constant 0 : i32
    return %c0_i32, %c0_i32_0, %c0_i32_1 : i32, i32, i32
  }
  func.func @transform_3(%arg0: i32) -> (i32, i32) {
    %c0_i32 = arith.constant 0 : i32
    %c0_i32_0 = arith.constant 0 : i32
    %c0_i32_1 = arith.constant 0 : i32
    return %c0_i32, %c0_i32_0 : i32, i32
  }
  func.func @transform_4(%arg0: i32) -> (i32, i32, i32) {
    %c0_i32 = arith.constant 0 : i32
    %c0_i32_0 = arith.constant 0 : i32
    %c0_i32_1 = arith.constant 0 : i32
    %c0_i32_2 = arith.constant 0 : i32
    return %c0_i32, %c0_i32_0, %c0_i32_1 : i32, i32, i32
  }
  func.func @transform_5(%arg0: i32) -> (i32, i32) {
    %c0_i32 = arith.constant 0 : i32
    %c0_i32_0 = arith.constant 0 : i32
    %c0_i32_1 = arith.constant 0 : i32
    return %c0_i32, %c0_i32_0 : i32, i32
  }
  func.func @transform_6(%arg0: i32) -> (i32, i32, i32) {
    %c0_i32 = arith.constant 0 : i32
    %c0_i32_0 = arith.constant 0 : i32
    %c0_i32_1 = arith.constant 0 : i32
    %c0_i32_2 = arith.constant 0 : i32
    return %c0_i32, %c0_i32_0, %c0_i32_1 : i32, i32, i32
  }
  func.func @transform_7(%arg0: i32) -> (i32, i32) {
    %c0_i32 = arith.constant 0 : i32
    %c0_i32_0 = arith.constant 0 : i32
    %c0_i32_1 = arith.constant 0 : i32
    return %c0_i32, %c0_i32_0 : i32, i32
  }
  func.func @transform_8(%arg0: i32) -> (i32, i32, i32) {
    %c0_i32 = arith.constant 0 : i32
    %c0_i32_0 = arith.constant 0 : i32
    %c0_i32_1 = arith.constant 0 : i32
    return %arg0, %c0_i32, %c0_i32_0 : i32, i32, i32
  }
}

</mosaic_0001>

<bundles_post_ra>
// kernel: _dense_block_forward.1
= control target key start
LH: loop header
LB: loop body
LE: loop exit
PB: predicated region body
PF: predicated region fallthrough
CT: control target
= control target key end

     0   :  { %s4331_s27 = smov 0   ;;  %s5055_s0 = inlined_call_operand.vmem [shape: f32[2,4,324], index: 0, kind: input, shape index: {}]   ;;  %s5056_s1 = inlined_call_operand.vmem [shape: f32[1,286], index: 1, kind: input, shape index: {}]   ;;  %s5057_s2 = inlined_call_operand.vmem [shape: bf16[9,8,4], index: 2, kind: input, shape index: {}]   ;;  %s5058_s3 = inlined_call_operand.vmem [shape: f32[8,1], index: 3, kind: input, shape index: {}]   ;;  %s5059_s4 = inlined_call_operand.vmem [shape: bf16[9,8,12], index: 4, kind: input, shape index: {}]   ;;  %s5060_s5 = inlined_call_operand.vmem [shape: f32[8,1], index: 5, kind: input, shape index: {}]   ;;  %s5061_s6 = inlined_call_operand.vmem [shape: bf16[9,8,20], index: 6, kind: input, shape index: {}]   ;;  %s5062_s7 = inlined_call_operand.vmem [shape: f32[8,1], index: 7, kind: input, shape index: {}]   ;;  %s5063_s8 = inlined_call_operand.vmem [shape: f32[2,28,324], index: 8, kind: output, shape index: {}]  }
   0x1 LB: > { %s3648_s28 = sadd.s32 4294967295, %s4272_s27   ;;  %p3652_p0 = scmp.ge.s32.totalorder %s4272_s27, 1  ;;  %s4272_s27 = sphi %s4331_s27, %s18_s27  }
   0x2   : > { %p262_p1 = scmp.lt.s32.totalorder %s4272_s27, 3 }
   0x4   : > { %p263_p2 = pnand %p3652_p0, %p262_p1 }
   0x5   : > { %p296_p3 = scmp.lt.s32.totalorder (!%p263_p2), %s3648_s28, 1  ;;  %vm5064_vm0 = vcmask (!%p263_p2), 551936   ;;  %vm328_vm1 = vcmask (!%p263_p2), 549888   ;;  %v4274_v0 = vmov (!%p263_p2), 0   ;;  %v4275_v1 = vmov (!%p263_p2), 0.0   ;;  %s4277_s15 = smov (!%p263_p2), 127  }
   0x6   : > { %266 = sbr.rel (%p263_p2) target bundleno = 1716 (0x6b4), region = 52  ;;  %322 = vst.msk [vmem:[#allocation2 + $0x8] sm:$0xf] (!%p263_p2), %vm5064_vm0, %v4274_v0  ;;  %321 = vst [vmem:[#allocation2] sm:$0xff] (!%p263_p2), %v4274_v0  ;;  %3853 = vmatprep.subr.bf16.mxu1 (!%p263_p2), %v4275_v1  ;;  %417 = vmatprep.mubr.bf16.mxu0 (!%p263_p2), %v4274_v0  ;;  %vm4276_vm2 = vmmov (!%p263_p2), 0   ;;  %vm5065_vm3 = vcmask (!%p263_p2), 1041408  }
   0x7   : > { %323 = vst [vmem:[#allocation2 + $0xc] sm:$0xff] (!%p263_p2), %v4274_v0  ;;  %324 = vst.msk [vmem:[#allocation2 + $0x14] sm:$0xf] (!%p263_p2), %vm5064_vm0, %v4274_v0  ;;  %3855 = vmatprep.mubr.msk.bf16.mxu1 (!%p263_p2), %vm4276_vm2, %v4275_v1  ;;  %4256 = vset.pattern.permute.xlu0 (!%p263_p2), %v4274_v0  ;;  %v362_v12 = vld [vmem:[%s5057_s2] sm:$0xf] (!%p263_p2)  ;;  %vm371_vm4 = vcmask (!%p263_p2), 31744  }
   0x8   : > { %325 = vst [vmem:[#allocation2 + $0x18] sm:$0xff] (!%p263_p2), %v4274_v0  ;;  %326 = vst.msk [vmem:[#allocation2 + $0x20] sm:$0xf] (!%p263_p2), %vm5064_vm0, %v4274_v0  ;;  %4257 = vset.pattern.permute.xlu1 (!%p263_p2), %v4274_v0  ;;  %s4278_s18 = smov (!%p263_p2), 126   ;;  %s4279_s19 = smov (!%p263_p2), 110   ;;  %v354_v14 = vld [vmem:[%s5058_s3] sm:$0xff] (!%p263_p2) }
   0x9   : > { %s4280_s20 = smov (!%p263_p2), 109   ;;  %s4281_s21 = smov (!%p263_p2), 108   ;;  %v3663_v17 = vld [vmem:[%s5057_s2 + $0x4] sm:$0xf] (!%p263_p2)  ;;  %vm477_vm5 = vcmask (!%p263_p2), 1039360   ;;  %vm584_vm6 = vcmask (!%p263_p2), 1031168  }
   0xa   : > { %s4282_s22 = smov (!%p263_p2), 92   ;;  %s4283_s23 = smov (!%p263_p2), 91   ;;  %v3667_v31 = vld [vmem:[%s5057_s2 + $0x8] sm:$0xf] (!%p263_p2)  ;;  %vm691_vm7 = vcmask (!%p263_p2), 900096   ;;  %vm798_vm8 = vcmask (!%p263_p2), 891904  }
   0xb   : > { %s4284_s24 = smov (!%p263_p2), 90   ;;  %v3671_v42 = vld [vmem:[%s5057_s2 + $0xc] sm:$0xf] (!%p263_p2)  ;;  %vm905_vm9 = vcmask (!%p263_p2), 883712   ;;  %v3675_v50 = vld [vmem:[%s5057_s2 + $0x10] sm:$0xf] (!%p263_p2) }
   0xc   : > { %vm1012_vm10 = vcmask (!%p263_p2), 752640   ;;  %v3679_v58 = vld [vmem:[%s5057_s2 + $0x14] sm:$0xf] (!%p263_p2)  ;;  %vm5067_vm11 = vcmask (!%p263_p2), 744448   ;;  %vm5066_vm12 = vcmask (!%p263_p2), 736256   ;;  %s4285_s12 = smov (!%p263_p2), 19  }
   0xd   : > { %s5109_s28 = smov (!%p296_p3, %s3648_s28), 1  ;;  %vm1409_vm13 = vcmask 1043610   ;;  %vm1410_vm14 = vcmask 1047558   ;;  %vm1359_vm15 = vcmask 154624  }
   0xe   : > { %s4234_s29 = smul.u32 12, %s5109_s28 }
   0xf   : > { %s4235_s30 = smul.u32 96, %s5109_s28 }
  0x10   : > { %s300_s11 = scalar_lea.vmem %s5055_s0, %s4234_s29 }
  0x11   : > { %s4360_s14 = scalar_lea.vmem %s5063_s8, %s4235_s30  ;;  %v4362_v2 = vld [vmem:[%s300_s11 + $0x8] sm:$0xf]  ;;  %v330_v3 = vld [vmem:[%s300_s11] sm:$0xff] }
  0x12   : > { %v3783_v4 = vpack.c.bf16 %v4362_v2, %v4362_v2  ;;  %v333_v5 = vcombine.high %v330_v3, %v330_v3  ;;  %307 = vst [vmem:[%s4360_s14] sm:$0xff] %v4275_v1  ;;  %308 = vst [vmem:[%s4360_s14 + $0x8] sm:$0xff] %v4275_v1 }
  0x13   : > { %311 = vst [vmem:[%s4360_s14 + $0x18] sm:$0xff] %v4275_v1  ;;  %312 = vst [vmem:[%s4360_s14 + $0x20] sm:$0xff] %v4275_v1 }
  0x14   : > { %314 = vst [vmem:[%s4360_s14 + $0x30] sm:$0xff] %v4275_v1  ;;  %315 = vst [vmem:[%s4360_s14 + $0x38] sm:$0xff] %v4275_v1  ;;  %v3782_v6 = vpack.c.bf16 %v333_v5, %v330_v3 }
  0x15   : > { %317 = vst [vmem:[%s4360_s14 + $0x48] sm:$0xf] %v4275_v1  ;;  %318 = vst [vmem:[%s4360_s14 + $0x50] sm:$0xf] %v4275_v1 }
  0x16   : > { %320 = vst.msk [vmem:[%s4360_s14 + $0x58] sm:$0xf] %vm5064_vm0, %v4275_v1  ;;  %335 = vst [vmem:[%s4360_s14] sm:$0xf] %v330_v3  ;;  %vm1415_vm0 = vcmask 1041560  }
  0x17   : > { %352 = vst.msk [vmem:[#allocation2 + $0x8] sm:$0x3] %vm328_vm1, %v3783_v4  ;;  %336 = vst [vmem:[%s4360_s14 + $0x8] sm:$0xf] %v333_v5  ;;  %v3683_v5 = vld [vmem:[%s5057_s2 + $0x18] sm:$0xf] }
  0x18   : > { %351 = vst [vmem:[#allocation2] sm:$0x33] %v3782_v6  ;;  %vm4565_vm1 = vmor %vm1410_vm14, %vm1409_vm13  ;;  %vm1419_vm13 = vcmask 394240   ;;  %vm1449_vm14 = vcmask 1045504  }
  0x1e   : > { %v4258_v7 = vld [vmem:[#allocation2 + $0x8] ss:$0 sps:$4 sm:$0x33]  }
  0x1f   : > { %475 = vrot.lane.b32.xlu1 %v4258_v7, %s4277_s15  ;;  %v360_v8 = vld [vmem:[#allocation2] sm:$0x33]  ;;  %v383_v9 = vsel %vm5065_vm3, %v4258_v7, 0 }
  0x20   : > { %v3657_v10 = vcombine.low %v360_v8, %v360_v8  ;;  %v3658_v11 = vcombine.high %v360_v8, %v360_v8  ;;  %3854 = vmatpush3.bf16.msra.mxu1 %v383_v9 }
  0x21   : > { %3859 = vmatprep.subr.bf16.mxu1 %v4275_v1 }
  0x22   : > { %471 = vrot.lane.b32.xlu0 %v3657_v10, %s4277_s15  ;;  %3660 = vmatprep.subr.msk.bf16.mxu0 %vm5065_vm3, %v3658_v11  ;;  %v377_v13 = vsel %vm5065_vm3, %v3657_v10, 0 }
  0x23   : > { %578 = vrot.lane.b32.xlu1 %v3657_v10, %s4278_s18  ;;  %3856 = vmatmul.mubr.msk.bf16.vlgmr.msra.gmra.mrb[0].mxu1 %vm371_vm4, %v362_v12 }
  0x24   : > { %386 = vmatpush1.bf16.msra.mxu0 %v377_v13  ;;  %3861 = vmatprep.mubr.msk.bf16.mxu1 %vm4276_vm2, %v4275_v1  ;;  %v3687_v13 = vld [vmem:[%s5057_s2 + $0x1c] sm:$0xf] }
  0x26   : > { %473 = vrot.lane.b32.xlu0 %v3658_v11, %s4277_s15 }
  0x27   : > { %582 = vrot.lane.b32.xlu1 %v4258_v7, %s4278_s18  ;;  %3661 = vmatmul.mubr.msk.bf16.vlgmr.msra.gmra.mrb[0].mxu0 %vm371_vm4, %v362_v12 }
  0x28   : > { %524 = vmatprep.mubr.bf16.mxu0 %v4274_v0 }
  0x2a   : > { %580 = vrot.lane.b32.xlu0 %v3658_v11, %s4278_s18 }
  0x2b   : > { %687 = vrot.lane.b32.xlu1 %v3658_v11, %s4279_s19 }
  0x2e   : > { %685 = vrot.lane.b32.xlu0 %v3657_v10, %s4279_s19 }
  0x2f   : > { %792 = vrot.lane.b32.xlu1 %v3657_v10, %s4280_s20 }
  0x32   : > { %689 = vrot.lane.b32.xlu0 %v4258_v7, %s4279_s19 }
  0x33   : > { %796 = vrot.lane.b32.xlu1 %v4258_v7, %s4280_s20 }
  0x36   : > { %794 = vrot.lane.b32.xlu0 %v3658_v11, %s4280_s20 }
  0x37   : > { %901 = vrot.lane.b32.xlu1 %v3658_v11, %s4281_s21 }
  0x3a   : > { %899 = vrot.lane.b32.xlu0 %v3657_v10, %s4281_s21 }
  0x3b   : > { %1006 = vrot.lane.b32.xlu1 %v3657_v10, %s4282_s22 }
  0x3e   : > { %903 = vrot.lane.b32.xlu0 %v4258_v7, %s4281_s21 }
  0x3f   : > { %1010 = vrot.lane.b32.xlu1 %v4258_v7, %s4282_s22 }
  0x42   : > { %1008 = vrot.lane.b32.xlu0 %v3658_v11, %s4282_s22 }
  0x43   : > { %1115 = vrot.lane.b32.xlu1 %v3658_v11, %s4283_s23 }
  0x46   : > { %1113 = vrot.lane.b32.xlu0 %v3657_v10, %s4283_s23 }
  0x47   : > { %1220 = vrot.lane.b32.xlu1 %v3657_v10, %s4284_s24 }
  0x4a   : > { %1117 = vrot.lane.b32.xlu0 %v4258_v7, %s4283_s23 }
  0x4b   : > { %1224 = vrot.lane.b32.xlu1 %v4258_v7, %s4284_s24 }
  0x4e   : > { %1222 = vrot.lane.b32.xlu0 %v3658_v11, %s4284_s24 }
  0x52   : > { %357 = vperm.xlu0 %4256, %v354_v14  }
  0x91   : > { %v476_v15 = vpop.permute.xlu1 %475 }
  0x92   : > { %v490_v16 = vsel %vm5065_vm3, %v476_v15, 0 }
  0x93   : > { %3860 = vmatpush3.bf16.msra.mxu1 %v490_v16 }
  0x94   : > { %v472_v18 = vpop.permute.xlu0 %471  ;;  %3865 = vmatprep.subr.bf16.mxu1 %v4275_v1 }
  0x95   : > { %v579_v19 = vpop.permute.xlu1 %578 }
  0x96   : > { %3862 = vmatmul.mubr.msk.bf16.vlgmr.msra.gmra.mrb[0].mxu1 %vm371_vm4, %v3663_v17 }
  0x97   : > { %3867 = vmatprep.mubr.msk.bf16.mxu1 %vm4276_vm2, %v4275_v1 }
  0x98   : > { %v474_v20 = vpop.permute.xlu0 %473 }
  0x99   : > { %v478_v21 = vsel %vm477_vm5, %v472_v18, %v474_v20  ;;  %v479_v22 = vsel %vm477_vm5, %v474_v20, %v476_v15  ;;  %v583_v23 = vpop.permute.xlu1 %582  ;;  %v1329_v18 = vlaneseq }
  0x9a   : > { %3664 = vmatprep.subr.msk.bf16.mxu0 %vm5065_vm3, %v479_v22  ;;  %v484_v24 = vsel %vm5065_vm3, %v478_v21, 0  ;;  %v597_v25 = vsel %vm5065_vm3, %v583_v23, 0  ;;  %v353_v21 = vld [vmem:[%s5056_s1] sm:$0x7] }
  0x9b   : > { %493 = vmatpush1.bf16.msra.mxu0 %v484_v24  ;;  %3866 = vmatpush3.bf16.msra.mxu1 %v597_v25 }
  0x9c   : > { %v581_v26 = vpop.permute.xlu0 %580  ;;  %3871 = vmatprep.subr.bf16.mxu1 %v4275_v1 }
  0x9d   : > { %v585_v27 = vsel %vm584_vm6, %v579_v19, %v581_v26  ;;  %v586_v28 = vsel %vm584_vm6, %v581_v26, %v583_v23  ;;  %v688_v29 = vpop.permute.xlu1 %687  ;;  %v1330_v19 = vshrl.u32 %v1329_v18, 7 }
  0x9e   : > { %3665 = vmatmul.mubr.msk.bf16.vlgmr.msra.gmra.mrb[0].mxu0 %vm371_vm4, %v3663_v17  ;;  %3668 = vmatprep.subr.msk.bf16.mxu0 %vm5065_vm3, %v586_v28  ;;  %v591_v30 = vsel %vm5065_vm3, %v585_v27, 0  ;;  %v3691_v17 = vld [vmem:[%s5057_s2 + $0x20] sm:$0xf] }
  0x9f   : > { %600 = vmatpush1.bf16.msra.mxu0 %v591_v30  ;;  %631 = vmatprep.mubr.bf16.mxu0 %v4274_v0  ;;  %v1339_v20 = vsub.s32 2, %v1330_v19 }
  0xa0   : > { %v686_v32 = vpop.permute.xlu0 %685 }
  0xa1   : > { %v793_v33 = vpop.permute.xlu1 %792  ;;  %v692_v35 = vsel %vm691_vm7, %v686_v32, %v688_v29  ;;  %v4542_v24 = vrot.slane %v353_v21, %v1339_v20  ;;  %v1335_v32 = vsub.s32 1, %v1330_v19 }
  0xa2   : > { %3868 = vmatmul.mubr.msk.bf16.vlgmr.msra.gmra.mrb[0].mxu1 %vm371_vm4, %v3667_v31  ;;  %v698_v38 = vsel %vm5065_vm3, %v692_v35, 0 }
  0xa3   : > { %3873 = vmatprep.mubr.msk.bf16.mxu1 %vm4276_vm2, %v4275_v1 }
  0xa4   : > { %v690_v34 = vpop.permute.xlu0 %689 }
  0xa5   : > { %v704_v36 = vsel %vm5065_vm3, %v690_v34, 0  ;;  %v693_v37 = vsel %vm691_vm7, %v688_v29, %v690_v34  ;;  %v797_v39 = vpop.permute.xlu1 %796 }
  0xa6   : > { %3872 = vmatpush3.bf16.msra.mxu1 %v704_v36  ;;  %3672 = vmatprep.subr.msk.bf16.mxu0 %vm5065_vm3, %v693_v37  ;;  %v811_v43 = vsel %vm5065_vm3, %v797_v39, 0 }
  0xa7   : > { %3877 = vmatprep.subr.bf16.mxu1 %v4275_v1 }
  0xa8   : > { %v795_v40 = vpop.permute.xlu0 %794 }
  0xa9   : > { %v800_v41 = vsel %vm798_vm8, %v795_v40, %v797_v39  ;;  %v799_v45 = vsel %vm798_vm8, %v793_v33, %v795_v40  ;;  %v902_v46 = vpop.permute.xlu1 %901  ;;  %v4551_v40 = vrot.slane %v353_v21, %v1335_v32 }
  0xaa   : > { %3669 = vmatmul.mubr.msk.bf16.vlgmr.msra.gmra.mrb[0].mxu0 %vm371_vm4, %v3667_v31  ;;  %v805_v47 = vsel %vm5065_vm3, %v799_v45, 0  ;;  %v1331_v31 = vsub.s32 0, %v1330_v19 }
  0xab   : > { %707 = vmatpush1.bf16.msra.mxu0 %v698_v38  ;;  %738 = vmatprep.mubr.bf16.mxu0 %v4274_v0 }
  0xac   : > { %3676 = vmatprep.subr.msk.bf16.mxu0 %vm5065_vm3, %v800_v41  ;;  %v900_v44 = vpop.permute.xlu0 %899  ;;  %v4549_v36 = vrot.slane %v353_v21, %v1331_v31  ;;  %v3703_v21 = vld [vmem:[%s5059_s4 + $0x4] sm:$0xf] }
  0xad   : > { %v1007_v52 = vpop.permute.xlu1 %1006  ;;  %v906_v53 = vsel %vm905_vm9, %v900_v44, %v902_v46 }
  0xae   : > { %3874 = vmatmul.mubr.msk.bf16.vlgmr.msra.gmra.mrb[0].mxu1 %vm371_vm4, %v3671_v42  ;;  %v912_v55 = vsel %vm5065_vm3, %v906_v53, 0 }
  0xaf   : > { %3878 = vmatpush3.bf16.msra.mxu1 %v811_v43  ;;  %3879 = vmatprep.mubr.msk.bf16.mxu1 %vm4276_vm2, %v4275_v1 }
  0xb0   : > { %3883 = vmatprep.subr.bf16.mxu1 %v4275_v1  ;;  %v904_v48 = vpop.permute.xlu0 %903 }
  0xb1   : > { %v907_v49 = vsel %vm905_vm9, %v902_v46, %v904_v48  ;;  %v918_v51 = vsel %vm5065_vm3, %v904_v48, 0  ;;  %v1011_v56 = vpop.permute.xlu1 %1010 }
  0xb2   : > { %v1025_v59 = vsel %vm5065_vm3, %v1011_v56, 0 }
  0xb4   : > { %v1009_v54 = vpop.permute.xlu0 %1008 }
  0xb5   : > { %v1014_v57 = vsel %vm1012_vm10, %v1009_v54, %v1011_v56  ;;  %v1013_v61 = vsel %vm1012_vm10, %v1007_v52, %v1009_v54  ;;  %v1116_v62 = vpop.permute.xlu1 %1115 }
  0xb6   : > { %3673 = vmatmul.mubr.msk.bf16.vlgmr.msra.gmra.mrb[0].mxu0 %vm371_vm4, %v3671_v42  ;;  %v1019_v63 = vsel %vm5065_vm3, %v1013_v61, 0 }
  0xb7   : > { %814 = vmatpush1.bf16.msra.mxu0 %v805_v47  ;;  %845 = vmatprep.mubr.bf16.mxu0 %v4274_v0 }
  0xb8   : > { %3680 = vmatprep.subr.msk.bf16.mxu0 %vm5065_vm3, %v907_v49  ;;  %v1114_v60 = vpop.permute.xlu0 %1113 }
  0xb9   : > { %v1221_v7 = vpop.permute.xlu1 %1220  ;;  %v1120_v8 = vsel %vm5067_vm11, %v1114_v60, %v1116_v62 }
  0xba   : > { %3880 = vmatmul.mubr.msk.bf16.vlgmr.msra.gmra.mrb[0].mxu1 %vm371_vm4, %v3675_v50  ;;  %v1126_v10 = vsel %vm5065_vm3, %v1120_v8, 0 }
  0xbb   : > { %3884 = vmatpush3.bf16.msra.mxu1 %v918_v51  ;;  %3885 = vmatprep.mubr.msk.bf16.mxu1 %vm4276_vm2, %v4275_v1 }
  0xbc   : > { %3889 = vmatprep.subr.bf16.mxu1 %v4275_v1  ;;  %v1118_v3 = vpop.permute.xlu0 %1117 }
  0xbd   : > { %v1121_v4 = vsel %vm5067_vm11, %v1116_v62, %v1118_v3  ;;  %v1132_v6 = vsel %vm5065_vm3, %v1118_v3, 0  ;;  %v1225_v11 = vpop.permute.xlu1 %1224 }
  0xbe   : > { %v1239_v14 = vsel %vm5065_vm3, %v1225_v11, 0 }
  0xc0   : > { %v1223_v9 = vpop.permute.xlu0 %1222 }
  0xc1   : > { %v1228_v12 = vsel %vm5066_vm12, %v1223_v9, %v1225_v11  ;;  %v1227_v15 = vsel %vm5066_vm12, %v1221_v7, %v1223_v9 }
  0xc2   : > { %3677 = vmatmul.mubr.msk.bf16.vlgmr.msra.gmra.mrb[0].mxu0 %vm371_vm4, %v3675_v50  ;;  %v1233_v16 = vsel %vm5065_vm3, %v1227_v15, 0 }
  0xc3   : > { %921 = vmatpush1.bf16.msra.mxu0 %v912_v55  ;;  %952 = vmatprep.mubr.bf16.mxu0 %v4274_v0 }
  0xc4   : > { %3684 = vmatprep.subr.msk.bf16.mxu0 %vm5065_vm3, %v1014_v57 }
  0xc6   : > { %3886 = vmatmul.mubr.msk.bf16.vlgmr.msra.gmra.mrb[0].mxu1 %vm371_vm4, %v3679_v58 }
  0xc7   : > { %3890 = vmatpush3.bf16.msra.mxu1 %v1025_v59  ;;  %3891 = vmatprep.mubr.msk.bf16.mxu1 %vm4276_vm2, %v4275_v1 }
  0xc8   : > { %3895 = vmatprep.subr.bf16.mxu1 %v4275_v1 }
  0xce   : > { %3681 = vmatmul.mubr.msk.bf16.vlgmr.msra.gmra.mrb[0].mxu0 %vm371_vm4, %v3679_v58 }
  0xcf   : > { %1028 = vmatpush1.bf16.msra.mxu0 %v1019_v63  ;;  %1059 = vmatprep.mubr.bf16.mxu0 %v4274_v0 }
  0xd0   : > { %3688 = vmatprep.subr.msk.bf16.mxu0 %vm5065_vm3, %v1121_v4 }
  0xd1   : > { %v358_v22 = vpop.permute.xlu0 %357 }
  0xd2   : > { %3892 = vmatmul.mubr.msk.bf16.vlgmr.msra.gmra.mrb[0].mxu1 %vm371_vm4, %v3683_v5 }
  0xd3   : > { %3896 = vmatpush3.bf16.msra.mxu1 %v1132_v6  ;;  %3897 = vmatprep.mubr.msk.bf16.mxu1 %vm4276_vm2, %v4275_v1 }
  0xd4   : > { %3901 = vmatprep.subr.bf16.mxu1 %v4275_v1 }
  0xda   : > { %3685 = vmatmul.mubr.msk.bf16.vlgmr.msra.gmra.mrb[0].mxu0 %vm371_vm4, %v3683_v5 }
  0xdb   : > { %1135 = vmatpush1.bf16.msra.mxu0 %v1126_v10  ;;  %1166 = vmatprep.mubr.bf16.mxu0 %v4274_v0  ;;  %v1431_v10 = vld [vmem:[%s5059_s4] sm:$0xf] }
  0xdc   : > { %3692 = vmatprep.subr.msk.bf16.mxu0 %vm5065_vm3, %v1228_v12  ;;  %vm1416_vm3 = vcmask 1045508   ;;  %v1421_v12 = vld [vmem:[%s5060_s5] sm:$0xff] }
  0xdd   : > { %vm4574_vm12 = vmor %vm1416_vm3, %vm1415_vm0  ;;  %vm1445_vm0 = vcmask 97280   ;;  %vm5072_vm3 = vcmask 736256  }
  0xde   : > { %3898 = vmatmul.mubr.msk.bf16.vlgmr.msra.gmra.mrb[0].mxu1 %vm371_vm4, %v3687_v13 }
  0xdf   : > { %3902 = vmatpush3.bf16.msra.mxu1 %v1239_v14  ;;  %3903 = vmatprep.mubr.msk.bf16.mxu1 %vm4276_vm2, %v4275_v1 }
  0xe0   : > { %3907 = vmatprep.subr.bf16.mxu1 %v4275_v1 }
  0xe6   : > { %3689 = vmatmul.mubr.msk.bf16.vlgmr.msra.gmra.mrb[0].mxu0 %vm371_vm4, %v3687_v13 }
  0xe7   : > { %1242 = vmatpush1.bf16.msra.mxu0 %v1233_v16  ;;  %1273 = vmatprep.mubr.bf16.mxu0 %v4274_v0 }
  0xea   : > { %3904 = vmatmul.mubr.msk.bf16.vlgmr.msra.gmra.mrb[0].mxu1 %vm371_vm4, %v3691_v17 }
  0xeb   : > { %3909 = vmatprep.mubr.msk.bf16.mxu1 %vm4276_vm2, %v4275_v1 }
  0xf2   : > { %3693 = vmatmul.mubr.msk.bf16.vlgmr.msra.gmra.mrb[0].mxu0 %vm371_vm4, %v3691_v17  ;;  %vm1413_vm4 = vcmask 396290  }
  0xf3   : > { %1491 = vmatprep.mubr.bf16.mxu0 %v4274_v0 }
 0x1bd   : > { %v1316_v23 = vpop.f32.mrb[0].mxu1 }
 0x1be   : > { %v4035_v25 = vadd.f32 %v1316_v23, %v358_v22  ;;  %v3905_v26 = vpop.f32.mrb[1].mxu1 }
 0x1bf   : > { %v1319_v27 = vpop.f32.mrb[2].mxu1 }
 0x1c0   : > { %v1327_v28 = vmax.f32 %v4035_v25, 0.0  ;;  %v3906_v29 = vpop.f32.mrb[3].mxu1 }
 0x1c2   : > { %v4545_v30 = vmul.f32 %v4542_v24, %v1327_v28 }
 0x1c4   : > { %v3785_v33 = vpack.c.bf16 %v4545_v30, %v4545_v30 }
 0x1c5   : > { %v1275_v34 = vpop.f32.mrb[0].mxu0 }
 0x1c6   : > { %v4033_v35 = vadd.f32 %v1275_v34, %v358_v22  ;;  %v1277_v37 = vpop.f32.mrb[1].mxu0  ;;  %v1387_v38 = vrot.slane %v3785_v33, 6 }
 0x1c7   : > { %v4034_v39 = vadd.f32 %v1277_v37, %v358_v22  ;;  %v1279_v41 = vpop.f32.mrb[2].mxu0 }
 0x1c8   : > { %v1325_v42 = vmax.f32 %v4033_v35, 0.0  ;;  %v1280_v43 = vpop.f32.mrb[3].mxu0  ;;  %1392 = vrot.lane.b32.xlu0 %v1387_v38, %s4285_s12  ;;  %v1389_v50 = vrot.slane %v1387_v38, 4  ;;  %v3707_v35 = vld [vmem:[%s5059_s4 + $0x8] sm:$0xf] }
 0x1c9   : > { %v1326_v44 = vmax.f32 %v4034_v39, 0.0 }
 0x1ca   : > { %v4555_v45 = vmul.f32 %v4549_v36, %v1325_v42 }
 0x1cb   : > { %v4558_v46 = vmul.f32 %v4551_v40, %v1326_v44 }
 0x1cd   : > { %v3784_v47 = vpack.c.bf16 %v4558_v46, %v4555_v45 }
 0x1cf   : > { %v1386_v48 = vrot.slane %v3784_v47, 6  ;;  %v3711_v47 = vld [vmem:[%s5059_s4 + $0xc] sm:$0xf] }
 0x1d1   : > { %1390 = vrot.lane.b32.xlu1 %v1386_v48, %s4285_s12  ;;  %v1388_v49 = vrot.slane %v1386_v48, 4 }
 0x1d5   : > { %1394 = vrot.lane.b32.xlu1 %v1388_v49, %s4285_s12 }
 0x1d9   : > { %1396 = vrot.lane.b32.xlu1 %v1389_v50, %s4285_s12 }
 0x23a   : > { %v1393_v54 = vpop.permute.xlu0 %1392 }
 0x243   : > { %v1391_v51 = vpop.permute.xlu1 %1390 }
 0x244   : > { %v1398_v53 = vrot.slane %v1391_v51, 4 }
 0x246   : > { %v1401_v55 = vsel %vm1359_vm15, %v1398_v53, %v1391_v51  ;;  %v1402_v56 = vsel %vm1359_vm15, %v1398_v53, %v1393_v54 }
 0x247   : > { %1412 = vst.msk [vmem:[#allocation2] sm:$0xcc] %vm4565_vm1, %v1401_v55  ;;  %v1395_v57 = vpop.permute.xlu1 %1394 }
 0x248   : > { %1414 = vst.msk [vmem:[#allocation2 + $0x8] sm:$0xc] %vm1413_vm4, %v1402_v56  ;;  %v1399_v59 = vrot.slane %v1395_v57, 4  ;;  %v3715_v56 = vld [vmem:[%s5059_s4 + $0x10] sm:$0xf] }
 0x24a   : > { %v1403_v60 = vsel %vm1359_vm15, %v1399_v59, %v1395_v57 }
 0x24b   : > { %1418 = vst.msk [vmem:[#allocation2 + $0xc] sm:$0x33] %vm4574_vm12, %v1403_v60  ;;  %v1397_v61 = vpop.permute.xlu1 %1396 }
 0x24c   : > { %v1404_v62 = vsel %vm1359_vm15, %v1399_v59, %v1397_v61 }
 0x24d   : > { %1420 = vst.msk [vmem:[#allocation2 + $0x14] sm:$0x3] %vm1419_vm13, %v1404_v62 }
 0x24e   : > { %v4583_v63 = vld [vmem:[#allocation2] sm:$0xff] }
 0x24f   : > { %v1428_v6 = vld [vmem:[#allocation2 + $0x8] sm:$0xf] }
 0x252   : > { %v1429_v3 = vld [vmem:[#allocation2 + $0xc] sm:$0x33] }
 0x253   : > { %v3697_v4 = vcombine.low %v4583_v63, %v1429_v3  ;;  %v3698_v5 = vcombine.high %v4583_v63, %v1429_v3 }
 0x254   : > { %v1430_v7 = vld [vmem:[#allocation2 + $0x14] sm:$0x3] }
 0x255   : > { %v3699_v8 = vcombine.low %v1428_v6, %v1430_v7  ;;  %1547 = vrot.lane.b32.xlu1 %v3698_v5, %s4277_s15  ;;  %3700 = vmatprep.subr.msk.bf16.mxu0 %vm1449_vm14, %v3698_v5  ;;  %v1451_v9 = vsel %vm1449_vm14, %v3697_v4, 0 }
 0x256   : > { %1545 = vrot.lane.b32.xlu0 %v3697_v4, %s4277_s15  ;;  %1460 = vmatpush1.bf16.msra.mxu0 %v1451_v9 }
 0x257   : > { %v1457_v11 = vsel %vm1449_vm14, %v3699_v8, 0 }
 0x258   : > { %3908 = vmatpush3.bf16.msra.mxu1 %v1457_v11 }
 0x259   : > { %1651 = vrot.lane.b32.xlu1 %v3697_v4, %s4278_s18  ;;  %3701 = vmatmul.mubr.msk.bf16.vlgmr.msra.gmra.mrb[4].mxu0 %vm1445_vm0, %v1431_v10 }
 0x25a   : > { %1549 = vrot.lane.b32.xlu0 %v3699_v8, %s4277_s15  ;;  %3913 = vmatprep.subr.bf16.mxu1 %v4275_v1 }
 0x25b   : > { %3910 = vmatmul.mubr.msk.bf16.vlgmr.msra.gmra.mrb[4].mxu1 %vm1445_vm0, %v1431_v10  ;;  %1597 = vmatprep.mubr.bf16.mxu0 %v4274_v0 }
 0x25c   : > { %3915 = vmatprep.mubr.msk.bf16.mxu1 %vm4276_vm2, %v4275_v1 }
 0x25d   : > { %1655 = vrot.lane.b32.xlu1 %v3699_v8, %s4278_s18 }
 0x25e   : > { %1653 = vrot.lane.b32.xlu0 %v3698_v5, %s4278_s18 }
 0x261   : > { %1759 = vrot.lane.b32.xlu1 %v3698_v5, %s4279_s19 }
 0x262   : > { %1757 = vrot.lane.b32.xlu0 %v3697_v4, %s4279_s19 }
 0x265   : > { %1863 = vrot.lane.b32.xlu1 %v3697_v4, %s4280_s20 }
 0x266   : > { %1761 = vrot.lane.b32.xlu0 %v3699_v8, %s4279_s19 }
 0x269   : > { %1867 = vrot.lane.b32.xlu1 %v3699_v8, %s4280_s20 }
 0x26a   : > { %1865 = vrot.lane.b32.xlu0 %v3698_v5, %s4280_s20 }
 0x26d   : > { %1971 = vrot.lane.b32.xlu1 %v3698_v5, %s4281_s21 }
 0x26e   : > { %1969 = vrot.lane.b32.xlu0 %v3697_v4, %s4281_s21 }
 0x271   : > { %2075 = vrot.lane.b32.xlu1 %v3697_v4, %s4282_s22 }
 0x272   : > { %1973 = vrot.lane.b32.xlu0 %v3699_v8, %s4281_s21 }
 0x275   : > { %2079 = vrot.lane.b32.xlu1 %v3699_v8, %s4282_s22 }
 0x276   : > { %2077 = vrot.lane.b32.xlu0 %v3698_v5, %s4282_s22 }
 0x279   : > { %2183 = vrot.lane.b32.xlu1 %v3698_v5, %s4283_s23 }
 0x27a   : > { %2181 = vrot.lane.b32.xlu0 %v3697_v4, %s4283_s23 }
 0x27d   : > { %2287 = vrot.lane.b32.xlu1 %v3697_v4, %s4284_s24 }
 0x27e   : > { %2185 = vrot.lane.b32.xlu0 %v3699_v8, %s4283_s23 }
 0x281   : > { %2291 = vrot.lane.b32.xlu1 %v3699_v8, %s4284_s24 }
 0x282   : > { %2289 = vrot.lane.b32.xlu0 %v3698_v5, %s4284_s24  ;;  %v3719_v5 = vld [vmem:[%s5059_s4 + $0x14] sm:$0xf] }
 0x286   : > { %1424 = vperm.xlu0 %4256, %v1421_v12  }
 0x2c7   : > { %v1548_v13 = vpop.permute.xlu1 %1547 }
 0x2c8   : > { %v1546_v14 = vpop.permute.xlu0 %1545 }
 0x2c9   : > { %v1551_v15 = vsel %vm477_vm5, %v1546_v14, %v1548_v13 }
 0x2ca   : > { %v1557_v20 = vsel %vm1449_vm14, %v1551_v15, 0 }
 0x2cb   : > { %v1652_v16 = vpop.permute.xlu1 %1651 }
 0x2cc   : > { %v1550_v17 = vpop.permute.xlu0 %1549 }
 0x2cd   : > { %v1552_v18 = vsel %vm477_vm5, %v1548_v13, %v1550_v17  ;;  %v1563_v19 = vsel %vm1449_vm14, %v1550_v17, 0  ;;  %v3723_v13 = vld [vmem:[%s5059_s4 + $0x18] sm:$0xf] }
 0x2ce   : > { %3704 = vmatprep.subr.msk.bf16.mxu0 %vm1449_vm14, %v1552_v18  ;;  %3914 = vmatpush3.bf16.msra.mxu1 %v1563_v19 }
 0x2cf   : > { %1566 = vmatpush1.bf16.msra.mxu0 %v1557_v20  ;;  %v1656_v22 = vpop.permute.xlu1 %1655  ;;  %3919 = vmatprep.subr.bf16.mxu1 %v4275_v1  ;;  %v3727_v20 = vld [vmem:[%s5059_s4 + $0x1c] sm:$0xf] }
 0x2d0   : > { %v1654_v23 = vpop.permute.xlu0 %1653  ;;  %v1669_v25 = vsel %vm1449_vm14, %v1656_v22, 0 }
 0x2d1   : > { %v1657_v26 = vsel %vm584_vm6, %v1652_v16, %v1654_v23  ;;  %v1658_v27 = vsel %vm584_vm6, %v1654_v23, %v1656_v22  ;;  %3916 = vmatmul.mubr.msk.bf16.vlgmr.msra.gmra.mrb[4].mxu1 %vm1445_vm0, %v3703_v21 }
 0x2d2   : > { %v1663_v28 = vsel %vm1449_vm14, %v1657_v26, 0  ;;  %3705 = vmatmul.mubr.msk.bf16.vlgmr.msra.gmra.mrb[4].mxu0 %vm1445_vm0, %v3703_v21  ;;  %3708 = vmatprep.subr.msk.bf16.mxu0 %vm1449_vm14, %v1658_v27 }
 0x2d3   : > { %3920 = vmatpush3.bf16.msra.mxu1 %v1669_v25  ;;  %1672 = vmatpush1.bf16.msra.mxu0 %v1663_v28  ;;  %v1760_v29 = vpop.permute.xlu1 %1759  ;;  %v3731_v25 = vld [vmem:[%s5059_s4 + $0x20] sm:$0xf] }
 0x2d4   : > { %v1758_v31 = vpop.permute.xlu0 %1757  ;;  %3921 = vmatprep.mubr.msk.bf16.mxu1 %vm4276_vm2, %v4275_v1  ;;  %3925 = vmatprep.subr.bf16.mxu1 %v4275_v1 }
 0x2d5   : > { %1703 = vmatprep.mubr.bf16.mxu0 %v4274_v0  ;;  %v1763_v37 = vsel %vm691_vm7, %v1758_v31, %v1760_v29 }
 0x2d6   : > { %v1769_v43 = vsel %vm1449_vm14, %v1763_v37, 0 }
 0x2d7   : > { %v1864_v32 = vpop.permute.xlu1 %1863 }
 0x2d8   : > { %v1762_v33 = vpop.permute.xlu0 %1761 }
 0x2d9   : > { %v1764_v34 = vsel %vm691_vm7, %v1760_v29, %v1762_v33  ;;  %v1775_v41 = vsel %vm1449_vm14, %v1762_v33, 0 }
 0x2da   : > { %3712 = vmatprep.subr.msk.bf16.mxu0 %vm1449_vm14, %v1764_v34 }
 0x2db   : > { %v1868_v38 = vpop.permute.xlu1 %1867 }
 0x2dc   : > { %v1866_v39 = vpop.permute.xlu0 %1865  ;;  %v1881_v51 = vsel %vm1449_vm14, %v1868_v38, 0 }
 0x2dd   : > { %v1870_v42 = vsel %vm798_vm8, %v1866_v39, %v1868_v38  ;;  %3922 = vmatmul.mubr.msk.bf16.vlgmr.msra.gmra.mrb[4].mxu1 %vm1445_vm0, %v3707_v35  ;;  %v1869_v48 = vsel %vm798_vm8, %v1864_v32, %v1866_v39 }
 0x2de   : > { %3926 = vmatpush3.bf16.msra.mxu1 %v1775_v41  ;;  %3709 = vmatmul.mubr.msk.bf16.vlgmr.msra.gmra.mrb[4].mxu0 %vm1445_vm0, %v3707_v35  ;;  %v1875_v53 = vsel %vm1449_vm14, %v1869_v48, 0 }
 0x2df   : > { %1778 = vmatpush1.bf16.msra.mxu0 %v1769_v43  ;;  %3927 = vmatprep.mubr.msk.bf16.mxu1 %vm4276_vm2, %v4275_v1  ;;  %v1972_v49 = vpop.permute.xlu1 %1971 }
 0x2e0   : > { %3716 = vmatprep.subr.msk.bf16.mxu0 %vm1449_vm14, %v1870_v42  ;;  %3931 = vmatprep.subr.bf16.mxu1 %v4275_v1  ;;  %v1970_v44 = vpop.permute.xlu0 %1969 }
 0x2e1   : > { %1809 = vmatprep.mubr.bf16.mxu0 %v4274_v0  ;;  %v1975_v57 = vsel %vm905_vm9, %v1970_v44, %v1972_v49 }
 0x2e2   : > { %v1981_v62 = vsel %vm1449_vm14, %v1975_v57, 0 }
 0x2e3   : > { %v2076_v55 = vpop.permute.xlu1 %2075 }
 0x2e4   : > { %v1974_v50 = vpop.permute.xlu0 %1973 }
 0x2e5   : > { %v1976_v54 = vsel %vm905_vm9, %v1972_v49, %v1974_v50  ;;  %v1987_v61 = vsel %vm1449_vm14, %v1974_v50, 0 }
 0x2e7   : > { %v2080_v60 = vpop.permute.xlu1 %2079 }
 0x2e8   : > { %v2078_v59 = vpop.permute.xlu0 %2077  ;;  %v2093_v9 = vsel %vm1449_vm14, %v2080_v60, 0 }
 0x2e9   : > { %3928 = vmatmul.mubr.msk.bf16.vlgmr.msra.gmra.mrb[4].mxu1 %vm1445_vm0, %v3711_v47  ;;  %v2082_v3 = vsel %vm1012_vm10, %v2078_v59, %v2080_v60  ;;  %v2081_v6 = vsel %vm1012_vm10, %v2076_v55, %v2078_v59 }
 0x2ea   : > { %3932 = vmatpush3.bf16.msra.mxu1 %v1881_v51  ;;  %3713 = vmatmul.mubr.msk.bf16.vlgmr.msra.gmra.mrb[4].mxu0 %vm1445_vm0, %v3711_v47  ;;  %v2087_v10 = vsel %vm1449_vm14, %v2081_v6, 0 }
 0x2eb   : > { %1884 = vmatpush1.bf16.msra.mxu0 %v1875_v53  ;;  %3933 = vmatprep.mubr.msk.bf16.mxu1 %vm4276_vm2, %v4275_v1  ;;  %v2184_v7 = vpop.permute.xlu1 %2183 }
 0x2ec   : > { %3720 = vmatprep.subr.msk.bf16.mxu0 %vm1449_vm14, %v1976_v54  ;;  %3937 = vmatprep.subr.bf16.mxu1 %v4275_v1  ;;  %v2182_v4 = vpop.permute.xlu0 %2181 }
 0x2ed   : > { %1915 = vmatprep.mubr.bf16.mxu0 %v4274_v0  ;;  %v2187_v14 = vsel %vm5067_vm11, %v2182_v4, %v2184_v7 }
 0x2ee   : > { %v2193_v18 = vsel %vm1449_vm14, %v2187_v14, 0 }
 0x2ef   : > { %v2288_v12 = vpop.permute.xlu1 %2287 }
 0x2f0   : > { %v2186_v8 = vpop.permute.xlu0 %2185 }
 0x2f1   : > { %v2188_v11 = vsel %vm5067_vm11, %v2184_v7, %v2186_v8  ;;  %v2199_v17 = vsel %vm1449_vm14, %v2186_v8, 0  ;;  %vm5073_vm11 = vmmov %vm5072_vm3  ;;  %v2464_v7 = vld [vmem:[#allocation2 + $0x8] sm:$0xf] }
 0x2f3   : > { %v2292_v16 = vpop.permute.xlu1 %2291 }
 0x2f4   : > { %v2290_v15 = vpop.permute.xlu0 %2289  ;;  %v2305_v22 = vsel %vm1449_vm14, %v2292_v16, 0 }
 0x2f5   : > { %3934 = vmatmul.mubr.msk.bf16.vlgmr.msra.gmra.mrb[4].mxu1 %vm1445_vm0, %v3715_v56  ;;  %v2294_v19 = vsel %vm5072_vm3, %v2290_v15, %v2292_v16  ;;  %v2293_v21 = vsel %vm5073_vm11, %v2288_v12, %v2290_v15  ;;  %vm5074_vm11 = vcmask 1041408   ;;  %v2469_v16 = vld [vmem:[%s5061_s6] sm:$0xf] }
 0x2f6   : > { %3938 = vmatpush3.bf16.msra.mxu1 %v1987_v61  ;;  %3717 = vmatmul.mubr.msk.bf16.vlgmr.msra.gmra.mrb[4].mxu0 %vm1445_vm0, %v3715_v56  ;;  %v2299_v23 = vsel %vm1449_vm14, %v2293_v21, 0 }
 0x2f7   : > { %1990 = vmatpush1.bf16.msra.mxu0 %v1981_v62  ;;  %3939 = vmatprep.mubr.msk.bf16.mxu1 %vm4276_vm2, %v4275_v1 }
 0x2f8   : > { %3724 = vmatprep.subr.msk.bf16.mxu0 %vm1449_vm14, %v2082_v3  ;;  %3943 = vmatprep.subr.bf16.mxu1 %v4275_v1 }
 0x2f9   : > { %2021 = vmatprep.mubr.bf16.mxu0 %v4274_v0 }
 0x301   : > { %3940 = vmatmul.mubr.msk.bf16.vlgmr.msra.gmra.mrb[4].mxu1 %vm1445_vm0, %v3719_v5 }
 0x302   : > { %3944 = vmatpush3.bf16.msra.mxu1 %v2093_v9  ;;  %3721 = vmatmul.mubr.msk.bf16.vlgmr.msra.gmra.mrb[4].mxu0 %vm1445_vm0, %v3719_v5 }
 0x303   : > { %2096 = vmatpush1.bf16.msra.mxu0 %v2087_v10  ;;  %3945 = vmatprep.mubr.msk.bf16.mxu1 %vm4276_vm2, %v4275_v1 }
 0x304   : > { %3728 = vmatprep.subr.msk.bf16.mxu0 %vm1449_vm14, %v2188_v11  ;;  %3949 = vmatprep.subr.bf16.mxu1 %v4275_v1 }
 0x305   : > { %2127 = vmatprep.mubr.bf16.mxu0 %v4274_v0  ;;  %v1425_v26 = vpop.permute.xlu0 %1424 }
 0x30d   : > { %3946 = vmatmul.mubr.msk.bf16.vlgmr.msra.gmra.mrb[4].mxu1 %vm1445_vm0, %v3723_v13 }
 0x30e   : > { %3950 = vmatpush3.bf16.msra.mxu1 %v2199_v17  ;;  %3725 = vmatmul.mubr.msk.bf16.vlgmr.msra.gmra.mrb[4].mxu0 %vm1445_vm0, %v3723_v13  ;;  %v2457_v17 = vld [vmem:[%s5062_s7] sm:$0xff] }
 0x30f   : > { %2202 = vmatpush1.bf16.msra.mxu0 %v2193_v18  ;;  %3951 = vmatprep.mubr.msk.bf16.mxu1 %vm4276_vm2, %v4275_v1  ;;  %v4856_v18 = vld [vmem:[%s4360_s14 + $0x18] sm:$0xff] }
 0x310   : > { %3732 = vmatprep.subr.msk.bf16.mxu0 %vm1449_vm14, %v2294_v19  ;;  %3955 = vmatprep.subr.bf16.mxu1 %v4275_v1  ;;  %v1352_v19 = vrot.slane %v4545_v30, 4  ;;  %vm5077_vm14 = vcmask 551936  }
 0x311   : > { %2233 = vmatprep.mubr.bf16.mxu0 %v4274_v0 }
 0x319   : > { %3952 = vmatmul.mubr.msk.bf16.vlgmr.msra.gmra.mrb[4].mxu1 %vm1445_vm0, %v3727_v20 }
 0x31a   : > { %3956 = vmatpush3.bf16.msra.mxu1 %v2305_v22  ;;  %3729 = vmatmul.mubr.msk.bf16.vlgmr.msra.gmra.mrb[4].mxu0 %vm1445_vm0, %v3727_v20 }
 0x31b   : > { %2308 = vmatpush1.bf16.msra.mxu0 %v2299_v23  ;;  %3957 = vmatprep.mubr.msk.bf16.mxu1 %vm4276_vm2, %v4275_v1 }
 0x31c   : > { %2339 = vmatprep.mubr.bf16.mxu0 %v4274_v0  ;;  %3961 = vmatprep.subr.bf16.mxu1 %v4275_v1 }
 0x325   : > { %3958 = vmatmul.mubr.msk.bf16.vlgmr.msra.gmra.mrb[4].mxu1 %vm1445_vm0, %v3731_v25 }
 0x326   : > { %3733 = vmatmul.mubr.msk.bf16.vlgmr.msra.gmra.mrb[4].mxu0 %vm1445_vm0, %v3731_v25  ;;  %3965 = vmatprep.mubr.msk.bf16.mxu1 %vm4276_vm2, %v4275_v1 }
 0x327   : > { %2539 = vmatprep.mubr.bf16.mxu0 %v4274_v0 }
 0x3f8   : > { %v2382_v27 = vpop.f32.mrb[4].mxu1 }
 0x3f9   : > { %v4038_v28 = vadd.f32 %v2382_v27, %v1425_v26  ;;  %v2341_v29 = vpop.f32.mrb[4].mxu0  ;;  %v3959_v31 = vpop.f32.mrb[5].mxu1 }
 0x3fa   : > { %v4036_v32 = vadd.f32 %v2341_v29, %v1425_v26  ;;  %v2343_v33 = vpop.f32.mrb[5].mxu0  ;;  %v2385_v34 = vpop.f32.mrb[6].mxu1 }
 0x3fb   : > { %v2393_v35 = vmax.f32 %v4038_v28, 0.0  ;;  %v4037_v37 = vadd.f32 %v2343_v33, %v1425_v26  ;;  %v2345_v38 = vpop.f32.mrb[6].mxu0  ;;  %v3960_v39 = vpop.f32.mrb[7].mxu1  ;;  %v3746_v33 = vld [vmem:[%s5061_s6 + $0x4] sm:$0xf] }
 0x3fc   : > { %v2391_v41 = vmax.f32 %v4036_v32, 0.0  ;;  %v2346_v42 = vpop.f32.mrb[7].mxu0 }
 0x3fd   : > { %v4739_v43 = vmul.f32 %v2393_v35, %v4542_v24  ;;  %v2392_v44 = vmax.f32 %v4037_v37, 0.0 }
 0x3fe   : > { %v4742_v47 = vmul.f32 %v2391_v41, %v4549_v36 }
 0x3ff   : > { %v4745_v48 = vmul.f32 %v2392_v44, %v4551_v40  ;;  %v3787_v49 = vpack.c.bf16 %v4739_v43, %v4739_v43  ;;  %v2402_v22 = vrot.slane %v4739_v43, 4 }
 0x400   : > { %v2400_v21 = vrot.slane %v4742_v47, 4 }
 0x401   : > { %v2432_v50 = vrot.slane %v3787_v49, 6  ;;  %v3786_v51 = vpack.c.bf16 %v4745_v48, %v4742_v47  ;;  %v2401_v20 = vrot.slane %v4745_v48, 4 }
 0x403   : > { %2437 = vrot.lane.b32.xlu0 %v2432_v50, %s4285_s12  ;;  %v2431_v53 = vrot.slane %v3786_v51, 6  ;;  %v2434_v54 = vrot.slane %v2432_v50, 4  ;;  %v3750_v50 = vld [vmem:[%s5061_s6 + $0x8] sm:$0xf] }
 0x405   : > { %2435 = vrot.lane.b32.xlu1 %v2431_v53, %s4285_s12  ;;  %v2433_v55 = vrot.slane %v2431_v53, 4 }
 0x407   : > { %2441 = vrot.lane.b32.xlu0 %v2434_v54, %s4285_s12 }
 0x409   : > { %2439 = vrot.lane.b32.xlu1 %v2433_v55, %s4285_s12 }
 0x475   : > { %v2438_v56 = vpop.permute.xlu0 %2437 }
 0x477   : > { %v2436_v57 = vpop.permute.xlu1 %2435 }
 0x478   : > { %v2443_v59 = vrot.slane %v2436_v57, 4 }
 0x479   : > { %v2442_v4 = vpop.permute.xlu0 %2441 }
 0x47a   : > { %v2445_v60 = vsel %vm1359_vm15, %v2443_v59, %v2436_v57  ;;  %v2446_v61 = vsel %vm1359_vm15, %v2443_v59, %v2438_v56 }
 0x47b   : > { %2453 = vst.msk [vmem:[#allocation2 + $0xc] sm:$0xcc] %vm4565_vm1, %v2445_v60  ;;  %v2440_v62 = vpop.permute.xlu1 %2439  ;;  %vm5076_vm1 = vmmov %vm5074_vm11 }
 0x47c   : > { %2454 = vst.msk [vmem:[#allocation2 + $0x14] sm:$0xc] %vm1413_vm4, %v2446_v61  ;;  %v2444_v3 = vrot.slane %v2440_v62, 4  ;;  %vm2494_vm4 = vcmask 162816   ;;  %vm5078_vm0 = vmmov %vm5076_vm1 }
 0x47d   : > { %vm5079_vm3 = vmmov %vm5078_vm0 }
 0x47e   : > { %v2447_v5 = vsel %vm1359_vm15, %v2444_v3, %v2440_v62  ;;  %v2448_v6 = vsel %vm1359_vm15, %v2444_v3, %v2442_v4 }
 0x47f   : > { %2455 = vst.msk [vmem:[#allocation2 + $0x18] sm:$0x33] %vm4574_vm12, %v2447_v5  ;;  %vm5075_vm12 = vmmov %vm5074_vm11  ;;  %v3754_v5 = vld [vmem:[%s5061_s6 + $0xc] sm:$0xf] }
 0x480   : > { %2456 = vst.msk [vmem:[#allocation2 + $0x20] sm:$0x3] %vm1419_vm13, %v2448_v6  ;;  %vm309_vm13 = vcmask 556032  }
 0x481   : > { %310 = vst.msk [vmem:[%s4360_s14 + $0x10] sm:$0xff] %vm309_vm13, %v4856_v18  ;;  %313 = vst.msk [vmem:[%s4360_s14 + $0x28] sm:$0xff] %vm309_vm13, %v4856_v18 }
 0x482   : > { %v2465_v8 = vld [vmem:[#allocation2 + $0xc] sm:$0xff]  ;;  %316 = vst.msk [vmem:[%s4360_s14 + $0x40] sm:$0xff] %vm309_vm13, %v4856_v18  ;;  %vm5085_vm13 = vmmov %vm5078_vm0 }
 0x483   : > { %v2466_v9 = vld [vmem:[#allocation2 + $0x14] sm:$0xf]  ;;  %v4766_v52 = vcombine.low %v4583_v63, %v2465_v8  ;;  %v4769_v10 = vcombine.high %v4583_v63, %v2465_v8  ;;  %337 = vst.msk [vmem:[%s4360_s14 + $0x10] sm:$0xf] %vm5077_vm14, %v4362_v2  ;;  %vm5086_vm14 = vmmov %vm5078_vm0 }
 0x484   : > { %v3739_v11 = vcombine.low %v2464_v7, %v2466_v9 }
 0x485   : > { %2507 = vmatprep.subr.bf16.mxu0 %v4769_v10  ;;  %2595 = vrot.lane.b32.xlu1 %v4769_v10, %s4277_s15 }
 0x486   : > { %2597 = vrot.lane.b32.xlu0 %v3739_v11, %s4277_s15  ;;  %v2467_v12 = vld [vmem:[#allocation2 + $0x18] sm:$0x33]  ;;  %3962 = vmatpush3.bf16.msra.mxu1 %v3739_v11 }
 0x487   : > { %v3740_v58 = vcombine.low %v2467_v12, %v2467_v12  ;;  %v3741_v13 = vcombine.high %v2467_v12, %v2467_v12  ;;  %v4264_v14 = vld [vmem:[#allocation2 + $0x20] ss:$0 sps:$4 sm:$0x33]   ;;  %2508 = vmatpush1.bf16.msra.mxu0 %v4766_v52  ;;  %3963 = vmatprep.subr.bf16.mxu1 %v4275_v1 }
 0x488   : > { %v2505_v15 = vsel %vm5076_vm1, %v4264_v14, 0  ;;  %vm5083_vm1 = vmmov %vm5078_vm0 }
 0x489   : > { %3743 = vmatprep.subr.msk.bf16.mxu0 %vm5074_vm11, %v3741_v13  ;;  %v2499_v63 = vsel %vm5075_vm12, %v3740_v58, 0  ;;  %2593 = vrot.lane.b32.xlu1 %v4766_v52, %s4277_s15  ;;  %vm5080_vm11 = vmmov %vm5078_vm0 }
 0x48a   : > { %2599 = vrot.lane.b32.xlu0 %v3740_v58, %s4277_s15  ;;  %3964 = vmatpush3.bf16.msra.mxu1 %v2505_v15  ;;  %vm5082_vm12 = vmmov %vm5078_vm0  ;;  %v3758_v15 = vld [vmem:[%s5061_s6 + $0x10] sm:$0xf] }
 0x48b   : > { %2510 = vmatpush1.bf16.msra.mxu0 %v2499_v63  ;;  %3969 = vmatprep.subr.bf16.mxu1 %v4275_v1 }
 0x48d   : > { %3966 = vmatmul.mubr.msk.bf16.vlgmr.msra.gmra.mrb[8].mxu1 %vm2494_vm4, %v2469_v16  ;;  %2601 = vrot.lane.b32.xlu1 %v3741_v13, %s4277_s15 }
 0x48e   : > { %2603 = vrot.lane.b32.xlu0 %v4264_v14, %s4277_s15  ;;  %3744 = vmatmul.mubr.msk.bf16.vlgmr.msra.gmra.mrb[8].mxu0 %vm2494_vm4, %v2469_v16 }
 0x48f   : > { %3973 = vmatprep.mubr.msk.bf16.mxu1 %vm4276_vm2, %v4275_v1  ;;  %2656 = vmatprep.mubr.bf16.mxu0 %v4274_v0  ;;  %v1350_v1 = vrot.slane %v4555_v45, 4  ;;  %v1351_v45 = vrot.slane %v4558_v46, 4 }
 0x491   : > { %2712 = vrot.lane.b32.xlu1 %v4769_v10, %s4278_s18 }
 0x492   : > { %2714 = vrot.lane.b32.xlu0 %v3739_v11, %s4278_s18 }
 0x495   : > { %2710 = vrot.lane.b32.xlu1 %v4766_v52, %s4278_s18 }
 0x496   : > { %2716 = vrot.lane.b32.xlu0 %v3740_v58, %s4278_s18 }
 0x499   : > { %2718 = vrot.lane.b32.xlu1 %v3741_v13, %s4278_s18 }
 0x49a   : > { %2720 = vrot.lane.b32.xlu0 %v4264_v14, %s4278_s18 }
 0x49d   : > { %2829 = vrot.lane.b32.xlu1 %v4769_v10, %s4279_s19 }
 0x49e   : > { %2831 = vrot.lane.b32.xlu0 %v3739_v11, %s4279_s19 }
 0x4a1   : > { %2827 = vrot.lane.b32.xlu1 %v4766_v52, %s4279_s19 }
 0x4a2   : > { %2833 = vrot.lane.b32.xlu0 %v3740_v58, %s4279_s19 }
 0x4a5   : > { %2835 = vrot.lane.b32.xlu1 %v3741_v13, %s4279_s19 }
 0x4a6   : > { %2837 = vrot.lane.b32.xlu0 %v4264_v14, %s4279_s19 }
 0x4a9   : > { %2946 = vrot.lane.b32.xlu1 %v4769_v10, %s4280_s20 }
 0x4aa   : > { %2948 = vrot.lane.b32.xlu0 %v3739_v11, %s4280_s20 }
 0x4ad   : > { %2944 = vrot.lane.b32.xlu1 %v4766_v52, %s4280_s20 }
 0x4ae   : > { %2950 = vrot.lane.b32.xlu0 %v3740_v58, %s4280_s20 }
 0x4b1   : > { %2952 = vrot.lane.b32.xlu1 %v3741_v13, %s4280_s20 }
 0x4b2   : > { %2954 = vrot.lane.b32.xlu0 %v4264_v14, %s4280_s20 }
 0x4b5   : > { %3063 = vrot.lane.b32.xlu1 %v4769_v10, %s4281_s21 }
 0x4b6   : > { %3065 = vrot.lane.b32.xlu0 %v3739_v11, %s4281_s21 }
 0x4b9   : > { %3061 = vrot.lane.b32.xlu1 %v4766_v52, %s4281_s21 }
 0x4ba   : > { %3067 = vrot.lane.b32.xlu0 %v3740_v58, %s4281_s21 }
 0x4bd   : > { %3069 = vrot.lane.b32.xlu1 %v3741_v13, %s4281_s21 }
 0x4be   : > { %3071 = vrot.lane.b32.xlu0 %v4264_v14, %s4281_s21 }
 0x4c1   : > { %3180 = vrot.lane.b32.xlu1 %v4769_v10, %s4282_s22 }
 0x4c2   : > { %3182 = vrot.lane.b32.xlu0 %v3739_v11, %s4282_s22 }
 0x4c5   : > { %3178 = vrot.lane.b32.xlu1 %v4766_v52, %s4282_s22 }
 0x4c6   : > { %3184 = vrot.lane.b32.xlu0 %v3740_v58, %s4282_s22 }
 0x4c9   : > { %3186 = vrot.lane.b32.xlu1 %v3741_v13, %s4282_s22 }
 0x4ca   : > { %3188 = vrot.lane.b32.xlu0 %v4264_v14, %s4282_s22 }
 0x4cd   : > { %3297 = vrot.lane.b32.xlu1 %v4769_v10, %s4283_s23 }
 0x4ce   : > { %3299 = vrot.lane.b32.xlu0 %v3739_v11, %s4283_s23 }
 0x4d1   : > { %3295 = vrot.lane.b32.xlu1 %v4766_v52, %s4283_s23 }
 0x4d2   : > { %3301 = vrot.lane.b32.xlu0 %v3740_v58, %s4283_s23 }
 0x4d5   : > { %3303 = vrot.lane.b32.xlu1 %v3741_v13, %s4283_s23 }
 0x4d6   : > { %3305 = vrot.lane.b32.xlu0 %v4264_v14, %s4283_s23 }
 0x4d9   : > { %3414 = vrot.lane.b32.xlu1 %v4769_v10, %s4284_s24 }
 0x4da   : > { %3416 = vrot.lane.b32.xlu0 %v3739_v11, %s4284_s24 }
 0x4dd   : > { %3412 = vrot.lane.b32.xlu1 %v4766_v52, %s4284_s24 }
 0x4de   : > { %3418 = vrot.lane.b32.xlu0 %v3740_v58, %s4284_s24 }
 0x4e1   : > { %3420 = vrot.lane.b32.xlu1 %v3741_v13, %s4284_s24 }
 0x4e2   : > { %3422 = vrot.lane.b32.xlu0 %v4264_v14, %s4284_s24 }
 0x4e5   : > { %2460 = vperm.xlu1 %4257, %v2457_v17  }
 0x4e6   : > { %1353 = vrot.lane.b32.xlu0 %v1350_v1, %s4285_s12 }
 0x4e9   : > { %1355 = vrot.lane.b32.xlu1 %v1351_v45, %s4285_s12 }
 0x4ea   : > { %1357 = vrot.lane.b32.xlu0 %v1352_v19, %s4285_s12 }
 0x4ed   : > { %2403 = vrot.lane.b32.xlu1 %v2400_v21, %s4285_s12 }
 0x4ee   : > { %2405 = vrot.lane.b32.xlu0 %v2401_v20, %s4285_s12 }
 0x4f1   : > { %2407 = vrot.lane.b32.xlu1 %v2402_v22, %s4285_s12 }
 0x4f7   : > { %v2596_v2 = vpop.permute.xlu1 %2595 }
 0x4f8   : > { %v2598_v30 = vpop.permute.xlu0 %2597 }
 0x4f9   : > { %3970 = vmatpush3.bf16.msra.mxu1 %v2598_v30  ;;  %v2606_v46 = vsel %vm477_vm5, %v2596_v2, %v2598_v30 }
 0x4fa   : > { %3971 = vmatprep.subr.bf16.mxu1 %v4856_v18  ;;  %2624 = vmatprep.subr.bf16.mxu0 %v2606_v46 }
 0x4fb   : > { %v2594_v25 = vpop.permute.xlu1 %2593 }
 0x4fc   : > { %v2600_v23 = vpop.permute.xlu0 %2599  ;;  %v2605_v26 = vsel %vm477_vm5, %v2594_v25, %v2596_v2  ;;  %v3762_v25 = vld [vmem:[%s5061_s6 + $0x14] sm:$0xf] }
 0x4fd   : > { %2625 = vmatpush1.bf16.msra.mxu0 %v2605_v26 }
 0x4ff   : > { %v2602_v29 = vpop.permute.xlu1 %2601 }
 0x500   : > { %v2604_v27 = vpop.permute.xlu0 %2603  ;;  %v2607_v31 = vsel %vm477_vm5, %v2600_v23, %v2602_v29 }
 0x501   : > { %v2622_v28 = vsel %vm5078_vm0, %v2604_v27, 0  ;;  %v2608_v32 = vsel %vm477_vm5, %v2602_v29, %v2604_v27  ;;  %v2616_v34 = vsel %vm5079_vm3, %v2607_v31, 0  ;;  %vm5081_vm5 = vmmov %vm5078_vm0 }
 0x502   : > { %3972 = vmatpush3.bf16.msra.mxu1 %v2622_v28  ;;  %3747 = vmatprep.subr.msk.bf16.mxu0 %vm5080_vm11, %v2608_v32  ;;  %vm5088_vm3 = vmmov %vm5078_vm0 }
 0x503   : > { %3977 = vmatprep.subr.bf16.mxu1 %v4856_v18  ;;  %2627 = vmatpush1.bf16.msra.mxu0 %v2616_v34  ;;  %v2713_v37 = vpop.permute.xlu1 %2712  ;;  %vm5090_vm11 = vmmov %vm5078_vm0 }
 0x504   : > { %v2715_v35 = vpop.permute.xlu0 %2714 }
 0x505   : > { %3974 = vmatmul.mubr.msk.bf16.vlgmr.msra.gmra.mrb[8].mxu1 %vm2494_vm4, %v3746_v33  ;;  %v2723_v38 = vsel %vm584_vm6, %v2713_v37, %v2715_v35 }
 0x506   : > { %3978 = vmatpush3.bf16.msra.mxu1 %v2715_v35  ;;  %3981 = vmatprep.mubr.msk.bf16.mxu1 %vm4276_vm2, %v4856_v18 }
 0x507   : > { %3748 = vmatmul.mubr.msk.bf16.vlgmr.msra.gmra.mrb[8].mxu0 %vm2494_vm4, %v3746_v33  ;;  %2741 = vmatprep.subr.bf16.mxu0 %v2723_v38  ;;  %v2711_v41 = vpop.permute.xlu1 %2710 }
 0x508   : > { %v2717_v39 = vpop.permute.xlu0 %2716  ;;  %3979 = vmatprep.subr.bf16.mxu1 %v4856_v18  ;;  %2773 = vmatprep.mubr.bf16.mxu0 %v4274_v0  ;;  %v2722_v42 = vsel %vm584_vm6, %v2711_v41, %v2713_v37  ;;  %v3766_v41 = vld [vmem:[%s5061_s6 + $0x18] sm:$0xf] }
 0x509   : > { %2742 = vmatpush1.bf16.msra.mxu0 %v2722_v42 }
 0x50b   : > { %v2719_v47 = vpop.permute.xlu1 %2718 }
 0x50c   : > { %v2721_v43 = vpop.permute.xlu0 %2720  ;;  %v2724_v48 = vsel %vm584_vm6, %v2717_v39, %v2719_v47 }
 0x50d   : > { %v2739_v44 = vsel %vm5081_vm5, %v2721_v43, 0  ;;  %v2725_v49 = vsel %vm584_vm6, %v2719_v47, %v2721_v43  ;;  %v2733_v51 = vsel %vm5082_vm12, %v2724_v48, 0  ;;  %vm5084_vm6 = vmmov %vm5078_vm0 }
 0x50e   : > { %3980 = vmatpush3.bf16.msra.mxu1 %v2739_v44  ;;  %3751 = vmatprep.subr.msk.bf16.mxu0 %vm5083_vm1, %v2725_v49  ;;  %vm5091_vm5 = vmmov %vm5078_vm0 }
 0x50f   : > { %3985 = vmatprep.subr.bf16.mxu1 %v4856_v18  ;;  %2744 = vmatpush1.bf16.msra.mxu0 %v2733_v51  ;;  %v2830_v54 = vpop.permute.xlu1 %2829  ;;  %vm5093_vm12 = vmmov %vm5078_vm0 }
 0x510   : > { %v2832_v53 = vpop.permute.xlu0 %2831  ;;  %vm5094_vm1 = vmmov %vm5078_vm0 }
 0x511   : > { %3982 = vmatmul.mubr.msk.bf16.vlgmr.msra.gmra.mrb[8].mxu1 %vm2494_vm4, %v3750_v50  ;;  %v2840_v55 = vsel %vm691_vm7, %v2830_v54, %v2832_v53 }
 0x512   : > { %3986 = vmatpush3.bf16.msra.mxu1 %v2832_v53  ;;  %3989 = vmatprep.mubr.msk.bf16.mxu1 %vm4276_vm2, %v4856_v18 }
 0x513   : > { %3752 = vmatmul.mubr.msk.bf16.vlgmr.msra.gmra.mrb[8].mxu0 %vm2494_vm4, %v3750_v50  ;;  %2858 = vmatprep.subr.bf16.mxu0 %v2840_v55  ;;  %v2828_v57 = vpop.permute.xlu1 %2827 }
 0x514   : > { %v2834_v56 = vpop.permute.xlu0 %2833  ;;  %3987 = vmatprep.subr.bf16.mxu1 %v4856_v18  ;;  %2890 = vmatprep.mubr.bf16.mxu0 %v4274_v0  ;;  %v2839_v59 = vsel %vm691_vm7, %v2828_v57, %v2830_v54  ;;  %v3770_v57 = vld [vmem:[%s5061_s6 + $0x1c] sm:$0xf] }
 0x515   : > { %2859 = vmatpush1.bf16.msra.mxu0 %v2839_v59 }
 0x517   : > { %v2836_v62 = vpop.permute.xlu1 %2835 }
 0x518   : > { %v2838_v60 = vpop.permute.xlu0 %2837  ;;  %v2841_v3 = vsel %vm691_vm7, %v2834_v56, %v2836_v62 }
 0x519   : > { %v2856_v61 = vsel %vm5084_vm6, %v2838_v60, 0  ;;  %v2842_v4 = vsel %vm691_vm7, %v2836_v62, %v2838_v60  ;;  %v2850_v6 = vsel %vm5085_vm13, %v2841_v3, 0  ;;  %vm5087_vm7 = vmmov %vm5078_vm0  ;;  %vm5095_vm6 = vcmask 744448  }
 0x51a   : > { %3988 = vmatpush3.bf16.msra.mxu1 %v2856_v61  ;;  %3755 = vmatprep.subr.msk.bf16.mxu0 %vm5086_vm14, %v2842_v4  ;;  %vm5097_vm13 = vmmov %vm5078_vm0 }
 0x51b   : > { %3993 = vmatprep.subr.bf16.mxu1 %v4856_v18  ;;  %2861 = vmatpush1.bf16.msra.mxu0 %v2850_v6  ;;  %v2947_v8 = vpop.permute.xlu1 %2946  ;;  %vm5098_vm14 = vmmov %vm5095_vm6 }
 0x51c   : > { %v2949_v7 = vpop.permute.xlu0 %2948 }
 0x51d   : > { %3990 = vmatmul.mubr.msk.bf16.vlgmr.msra.gmra.mrb[8].mxu1 %vm2494_vm4, %v3754_v5  ;;  %v2957_v9 = vsel %vm798_vm8, %v2947_v8, %v2949_v7 }
 0x51e   : > { %3994 = vmatpush3.bf16.msra.mxu1 %v2949_v7  ;;  %3997 = vmatprep.mubr.msk.bf16.mxu1 %vm4276_vm2, %v4856_v18 }
 0x51f   : > { %3756 = vmatmul.mubr.msk.bf16.vlgmr.msra.gmra.mrb[8].mxu0 %vm2494_vm4, %v3754_v5  ;;  %2975 = vmatprep.subr.bf16.mxu0 %v2957_v9  ;;  %v2945_v10 = vpop.permute.xlu1 %2944 }
 0x520   : > { %v2951_v52 = vpop.permute.xlu0 %2950  ;;  %3995 = vmatprep.subr.bf16.mxu1 %v4856_v18  ;;  %3007 = vmatprep.mubr.bf16.mxu0 %v4274_v0  ;;  %v2956_v11 = vsel %vm798_vm8, %v2945_v10, %v2947_v8 }
 0x521   : > { %2976 = vmatpush1.bf16.msra.mxu0 %v2956_v11 }
 0x523   : > { %v2953_v13 = vpop.permute.xlu1 %2952 }
 0x524   : > { %v2955_v12 = vpop.permute.xlu0 %2954  ;;  %v2958_v14 = vsel %vm798_vm8, %v2951_v52, %v2953_v13 }
 0x525   : > { %v2973_v58 = vsel %vm5087_vm7, %v2955_v12, 0  ;;  %v2959_v63 = vsel %vm798_vm8, %v2953_v13, %v2955_v12  ;;  %v2967_v16 = vsel %vm5078_vm0, %v2958_v14, 0  ;;  %vm5089_vm8 = vmmov %vm5078_vm0 }
 0x526   : > { %3996 = vmatpush3.bf16.msra.mxu1 %v2973_v58  ;;  %3759 = vmatprep.subr.msk.bf16.mxu0 %vm5088_vm3, %v2959_v63  ;;  %vm5099_vm7 = vmmov %vm5095_vm6 }
 0x527   : > { %4001 = vmatprep.subr.bf16.mxu1 %v4856_v18  ;;  %2978 = vmatpush1.bf16.msra.mxu0 %v2967_v16  ;;  %v3064_v17 = vpop.permute.xlu1 %3063  ;;  %vm5100_vm3 = vmmov %vm5078_vm0 }
 0x528   : > { %v3066_v1 = vpop.permute.xlu0 %3065 }
 0x529   : > { %3998 = vmatmul.mubr.msk.bf16.vlgmr.msra.gmra.mrb[8].mxu1 %vm2494_vm4, %v3758_v15  ;;  %v3074_v19 = vsel %vm905_vm9, %v3064_v17, %v3066_v1 }
 0x52a   : > { %4002 = vmatpush3.bf16.msra.mxu1 %v3066_v1  ;;  %4005 = vmatprep.mubr.msk.bf16.mxu1 %vm4276_vm2, %v4856_v18 }
 0x52b   : > { %3760 = vmatmul.mubr.msk.bf16.vlgmr.msra.gmra.mrb[8].mxu0 %vm2494_vm4, %v3758_v15  ;;  %3092 = vmatprep.subr.bf16.mxu0 %v3074_v19  ;;  %v3062_v20 = vpop.permute.xlu1 %3061 }
 0x52c   : > { %v3068_v45 = vpop.permute.xlu0 %3067  ;;  %4003 = vmatprep.subr.bf16.mxu1 %v4856_v18  ;;  %3124 = vmatprep.mubr.bf16.mxu0 %v4274_v0  ;;  %v3073_v21 = vsel %vm905_vm9, %v3062_v20, %v3064_v17 }
 0x52d   : > { %3093 = vmatpush1.bf16.msra.mxu0 %v3073_v21 }
 0x52f   : > { %v3070_v2 = vpop.permute.xlu1 %3069 }
 0x530   : > { %v3072_v22 = vpop.permute.xlu0 %3071  ;;  %v3075_v46 = vsel %vm905_vm9, %v3068_v45, %v3070_v2 }
 0x531   : > { %v3090_v30 = vsel %vm5089_vm8, %v3072_v22, 0  ;;  %v3076_v23 = vsel %vm905_vm9, %v3070_v2, %v3072_v22  ;;  %v3084_v26 = vsel %vm5090_vm11, %v3075_v46, 0  ;;  %vm5092_vm9 = vmmov %vm5078_vm0  ;;  %vm5101_vm8 = vcmask 736256  }
 0x532   : > { %4004 = vmatpush3.bf16.msra.mxu1 %v3090_v30  ;;  %3763 = vmatprep.subr.msk.bf16.mxu0 %vm5091_vm5, %v3076_v23  ;;  %vm5102_vm11 = vmmov %vm5101_vm8 }
 0x533   : > { %4009 = vmatprep.subr.bf16.mxu1 %v4856_v18  ;;  %3095 = vmatpush1.bf16.msra.mxu0 %v3084_v26  ;;  %v3181_v28 = vpop.permute.xlu1 %3180  ;;  %vm5103_vm5 = vmmov %vm5078_vm0 }
 0x534   : > { %v3183_v27 = vpop.permute.xlu0 %3182 }
 0x535   : > { %4006 = vmatmul.mubr.msk.bf16.vlgmr.msra.gmra.mrb[8].mxu1 %vm2494_vm4, %v3762_v25  ;;  %v3191_v29 = vsel %vm1012_vm10, %v3181_v28, %v3183_v27 }
 0x536   : > { %4010 = vmatpush3.bf16.msra.mxu1 %v3183_v27  ;;  %4013 = vmatprep.mubr.msk.bf16.mxu1 %vm4276_vm2, %v4856_v18 }
 0x537   : > { %3764 = vmatmul.mubr.msk.bf16.vlgmr.msra.gmra.mrb[8].mxu0 %vm2494_vm4, %v3762_v25  ;;  %3209 = vmatprep.subr.bf16.mxu0 %v3191_v29  ;;  %v3179_v32 = vpop.permute.xlu1 %3178 }
 0x538   : > { %v3185_v31 = vpop.permute.xlu0 %3184  ;;  %4011 = vmatprep.subr.bf16.mxu1 %v4856_v18  ;;  %3241 = vmatprep.mubr.bf16.mxu0 %v4274_v0  ;;  %v3190_v33 = vsel %vm1012_vm10, %v3179_v32, %v3181_v28 }
 0x539   : > { %3210 = vmatpush1.bf16.msra.mxu0 %v3190_v33 }
 0x53b   : > { %v3187_v37 = vpop.permute.xlu1 %3186 }
 0x53c   : > { %v3189_v34 = vpop.permute.xlu0 %3188  ;;  %v3192_v38 = vsel %vm1012_vm10, %v3185_v31, %v3187_v37 }
 0x53d   : > { %v3207_v35 = vsel %vm5092_vm9, %v3189_v34, 0  ;;  %v3193_v39 = vsel %vm1012_vm10, %v3187_v37, %v3189_v34  ;;  %v3201_v42 = vsel %vm5093_vm12, %v3192_v38, 0  ;;  %vm5096_vm10 = vmmov %vm5095_vm6  ;;  %vm1365_vm12 = vcmask 1047708  }
 0x53e   : > { %4012 = vmatpush3.bf16.msra.mxu1 %v3207_v35  ;;  %3767 = vmatprep.subr.msk.bf16.mxu0 %vm5094_vm1, %v3193_v39  ;;  %vm5104_vm9 = vmmov %vm5101_vm8  ;;  %vm1370_vm1 = vcmask 1043608  }
 0x53f   : > { %4017 = vmatprep.subr.bf16.mxu1 %v4856_v18  ;;  %3212 = vmatpush1.bf16.msra.mxu0 %v3201_v42  ;;  %v3298_v44 = vpop.permute.xlu1 %3297 }
 0x540   : > { %v3300_v43 = vpop.permute.xlu0 %3299 }
 0x541   : > { %4014 = vmatmul.mubr.msk.bf16.vlgmr.msra.gmra.mrb[8].mxu1 %vm2494_vm4, %v3766_v41  ;;  %v3308_v47 = vsel %vm5095_vm6, %v3298_v44, %v3300_v43  ;;  %vm5106_vm6 = vmmov %vm5078_vm0 }
 0x542   : > { %4018 = vmatpush3.bf16.msra.mxu1 %v3300_v43  ;;  %4021 = vmatprep.mubr.msk.bf16.mxu1 %vm4276_vm2, %v4856_v18 }
 0x543   : > { %3768 = vmatmul.mubr.msk.bf16.vlgmr.msra.gmra.mrb[8].mxu0 %vm2494_vm4, %v3766_v41  ;;  %3326 = vmatprep.subr.bf16.mxu0 %v3308_v47  ;;  %v3296_v49 = vpop.permute.xlu1 %3295 }
 0x544   : > { %v3302_v48 = vpop.permute.xlu0 %3301  ;;  %4019 = vmatprep.subr.bf16.mxu1 %v4856_v18  ;;  %3358 = vmatprep.mubr.bf16.mxu0 %v4274_v0  ;;  %v3307_v50 = vsel %vm5096_vm10, %v3296_v49, %v3298_v44  ;;  %vm5107_vm10 = vmmov %vm5078_vm0 }
 0x545   : > { %3327 = vmatpush1.bf16.msra.mxu0 %v3307_v50 }
 0x547   : > { %v3304_v54 = vpop.permute.xlu1 %3303 }
 0x548   : > { %v3306_v51 = vpop.permute.xlu0 %3305  ;;  %v3309_v55 = vsel %vm5098_vm14, %v3302_v48, %v3304_v54  ;;  %vm1373_vm14 = vcmask 396288  }
 0x549   : > { %v3324_v53 = vsel %vm5097_vm13, %v3306_v51, 0  ;;  %v3310_v56 = vsel %vm5099_vm7, %v3304_v54, %v3306_v51  ;;  %v3318_v59 = vsel %vm5078_vm0, %v3309_v55, 0  ;;  %vm1368_vm13 = vcmask 400388  }
 0x54a   : > { %4020 = vmatpush3.bf16.msra.mxu1 %v3324_v53  ;;  %3771 = vmatprep.subr.msk.bf16.mxu0 %vm5100_vm3, %v3310_v56 }
 0x54b   : > { %4025 = vmatprep.subr.bf16.mxu1 %v4856_v18  ;;  %3329 = vmatpush1.bf16.msra.mxu0 %v3318_v59  ;;  %v3415_v61 = vpop.permute.xlu1 %3414 }
 0x54c   : > { %v3417_v60 = vpop.permute.xlu0 %3416 }
 0x54d   : > { %4022 = vmatmul.mubr.msk.bf16.vlgmr.msra.gmra.mrb[8].mxu1 %vm2494_vm4, %v3770_v57  ;;  %v3425_v62 = vsel %vm5101_vm8, %v3415_v61, %v3417_v60 }
 0x54e   : > { %4026 = vmatpush3.bf16.msra.mxu1 %v3417_v60  ;;  %4029 = vmatprep.mubr.msk.bf16.mxu1 %vm4276_vm2, %v4856_v18  ;;  %vm5105_vm2 = vmmov %vm5101_vm8 }
 0x54f   : > { %3772 = vmatmul.mubr.msk.bf16.vlgmr.msra.gmra.mrb[8].mxu0 %vm2494_vm4, %v3770_v57  ;;  %3443 = vmatprep.subr.bf16.mxu0 %v3425_v62  ;;  %v3413_v4 = vpop.permute.xlu1 %3412 }
 0x550   : > { %v3419_v3 = vpop.permute.xlu0 %3418  ;;  %4027 = vmatprep.subr.bf16.mxu1 %v4856_v18  ;;  %3475 = vmatprep.mubr.bf16.mxu0 %v4274_v0  ;;  %v3424_v5 = vsel %vm5102_vm11, %v3413_v4, %v3415_v61  ;;  %v3774_v0 = vld [vmem:[%s5061_s6 + $0x20] sm:$0xf] }
 0x551   : > { %3444 = vmatpush1.bf16.msra.mxu0 %v3424_v5 }
 0x553   : > { %v3421_v8 = vpop.permute.xlu1 %3420 }
 0x554   : > { %v3423_v6 = vpop.permute.xlu0 %3422  ;;  %v3426_v9 = vsel %vm5104_vm9, %v3419_v3, %v3421_v8 }
 0x555   : > { %v3441_v7 = vsel %vm5103_vm5, %v3423_v6, 0  ;;  %v3427_v52 = vsel %vm5105_vm2, %v3421_v8, %v3423_v6  ;;  %v3435_v18 = vsel %vm5106_vm6, %v3426_v9, 0 }
 0x556   : > { %4028 = vmatpush3.bf16.msra.mxu1 %v3441_v7  ;;  %3775 = vmatprep.subr.msk.bf16.mxu0 %vm5107_vm10, %v3427_v52 }
 0x557   : > { %3446 = vmatpush1.bf16.msra.mxu0 %v3435_v18 }
 0x558   : > { %v1354_v10 = vpop.permute.xlu0 %1353 }
 0x559   : > { %1366 = vst.msk [vmem:[%s4360_s14] sm:$0xf0] %vm1365_vm12, %v1354_v10  ;;  %4030 = vmatmul.mubr.msk.bf16.vlgmr.msra.gmra.mrb[8].mxu1 %vm2494_vm4, %v3774_v0 }
 0x55a   : > { %1371 = vst.msk [vmem:[%s4360_s14 + $0x18] sm:$0xf] %vm1370_vm1, %v1354_v10 }
 0x55b   : > { %3776 = vmatmul.mubr.msk.bf16.vlgmr.msra.gmra.mrb[8].mxu0 %vm2494_vm4, %v3774_v0 }
 0x55c   : > { %v1358_v12 = vpop.permute.xlu0 %1357 }
 0x560   : > { %v2406_v63 = vpop.permute.xlu0 %2405 }
 0x564   : > { %v2461_v11 = vpop.permute.xlu1 %2460 }
 0x568   : > { %v1356_v58 = vpop.permute.xlu1 %1355 }
 0x569   : > { %v1360_v13 = vsel %vm1359_vm15, %v1354_v10, %v1356_v58  ;;  %v1361_v14 = vsel %vm1359_vm15, %v1356_v58, %v1358_v12 }
 0x56a   : > { %1367 = vst [vmem:[%s4360_s14 + $0x20] ss:$-20 sps:$4 sm:$0xff] %v1360_v13   ;;  %1369 = vst.msk [vmem:[%s4360_s14 + $0x10] sm:$0xf0] %vm1368_vm13, %v1361_v14 }
 0x56b   : > { %1374 = vst.msk [vmem:[%s4360_s14 + $0x28] sm:$0xf] %vm1373_vm14, %v1361_v14 }
 0x56c   : > { %v2404_v15 = vpop.permute.xlu1 %2403 }
 0x56d   : > { %v2409_v16 = vsel %vm1359_vm15, %v2404_v15, %v2406_v63  ;;  %2414 = vst.msk [vmem:[%s4360_s14 + $0x18] sm:$0xf0] %vm1365_vm12, %v2404_v15 }
 0x56e   : > { %2417 = vst.msk [vmem:[%s4360_s14 + $0x30] sm:$0xf] %vm1370_vm1, %v2404_v15  ;;  %2415 = vst [vmem:[%s4360_s14 + $0x38] ss:$-20 sps:$4 sm:$0xff] %v2409_v16  }
 0x570   : > { %v2408_v1 = vpop.permute.xlu1 %2407 }
 0x571   : > { %v2410_v17 = vsel %vm1359_vm15, %v2406_v63, %v2408_v1 }
 0x572   : > { %2416 = vst.msk [vmem:[%s4360_s14 + $0x28] sm:$0xf0] %vm1368_vm13, %v2410_v17 }
 0x573   : > { %2419 = vst.msk [vmem:[%s4360_s14 + $0x40] sm:$0xf] %vm1373_vm14, %v2410_v17 }
 0x62c   : > { %v3518_v19 = vpop.f32.mrb[8].mxu1 }
 0x62d   : > { %v4041_v45 = vadd.f32 %v3518_v19, %v2461_v11  ;;  %v4031_v20 = vpop.f32.mrb[9].mxu1 }
 0x62e   : > { %v3477_v21 = vpop.f32.mrb[8].mxu0  ;;  %v3521_v22 = vpop.f32.mrb[10].mxu1 }
 0x62f   : > { %v3529_v30 = vmax.f32 %v4041_v45, 0.0  ;;  %v4039_v2 = vadd.f32 %v3477_v21, %v2461_v11  ;;  %v3479_v46 = vpop.f32.mrb[9].mxu0  ;;  %v4032_v23 = vpop.f32.mrb[11].mxu1 }
 0x630   : > { %v4040_v25 = vadd.f32 %v3479_v46, %v2461_v11  ;;  %v3481_v26 = vpop.f32.mrb[10].mxu0 }
 0x631   : > { %v3532_v27 = vmul.f32 %v3529_v30, %v4542_v24  ;;  %v3527_v28 = vmax.f32 %v4039_v2, 0.0  ;;  %v3482_v29 = vpop.f32.mrb[11].mxu0 }
 0x632   : > { %v3528_v31 = vmax.f32 %v4040_v25, 0.0 }
 0x633   : > { %v3538_v32 = vrot.slane %v3532_v27, 4  ;;  %v3530_v33 = vmul.f32 %v3527_v28, %v4549_v36  ;;  %v3789_v38 = vpack.c.bf16 %v3532_v27, %v3532_v27 }
 0x634   : > { %v3531_v34 = vmul.f32 %v3528_v31, %v4551_v40 }
 0x635   : > { %3543 = vrot.lane.b32.xlu0 %v3538_v32, %s4285_s12  ;;  %v3536_v39 = vrot.slane %v3530_v33, 4  ;;  %v3568_v36 = vrot.slane %v3789_v38, 6 }
 0x636   : > { %v3537_v35 = vrot.slane %v3531_v34, 4  ;;  %v3788_v37 = vpack.c.bf16 %v3531_v34, %v3530_v33 }
 0x637   : > { %v3570_v40 = vrot.slane %v3568_v36, 4 }
 0x638   : > { %v3567_v41 = vrot.slane %v3788_v37, 6  ;;  %3541 = vrot.lane.b32.xlu1 %v3537_v35, %s4285_s12 }
 0x639   : > { %3539 = vrot.lane.b32.xlu0 %v3536_v39, %s4285_s12 }
 0x63a   : > { %v3569_v24 = vrot.slane %v3567_v41, 4 }
 0x63c   : > { %3575 = vrot.lane.b32.xlu1 %v3569_v24, %s4285_s12 }
 0x63d   : > { %3571 = vrot.lane.b32.xlu0 %v3567_v41, %s4285_s12 }
 0x640   : > { %3573 = vrot.lane.b32.xlu1 %v3568_v36, %s4285_s12 }
 0x641   : > { %3577 = vrot.lane.b32.xlu0 %v3570_v40, %s4285_s12 }
 0x6a7   : > { %v3544_v42 = vpop.permute.xlu0 %3543 }
 0x6aa   : > { %v3542_v43 = vpop.permute.xlu1 %3541 }
 0x6ab   : > { %v3546_v44 = vsel %vm1359_vm15, %v3542_v43, %v3544_v42  ;;  %v3540_v47 = vpop.permute.xlu0 %3539 }
 0x6ac   : > { %3552 = vst.msk [vmem:[%s4360_s14 + $0x40] sm:$0xf0] %vm1368_vm13, %v3546_v44  ;;  %v3545_v48 = vsel %vm1359_vm15, %v3540_v47, %v3542_v43 }
 0x6ad   : > { %3555 = vst.msk [vmem:[%s4360_s14 + $0x58] sm:$0xf] %vm1373_vm14, %v3546_v44  ;;  %3551 = vst [vmem:[%s4360_s14 + $0x50] ss:$-20 sps:$4 sm:$0xff] %v3545_v48  }
 0x6ae   : > { %3550 = vst.msk [vmem:[%s4360_s14 + $0x30] sm:$0xf0] %vm1365_vm12, %v3540_v47  ;;  %v3576_v49 = vpop.permute.xlu1 %3575 }
 0x6af   : > { %3553 = vst.msk [vmem:[%s4360_s14 + $0x48] sm:$0xf] %vm1370_vm1, %v3540_v47  ;;  %v3572_v50 = vpop.permute.xlu0 %3571 }
 0x6b2   : > { %v3574_v51 = vpop.permute.xlu1 %3573 }
 0x6b3   : > { %v3578_v53 = vpop.permute.xlu0 %3577 }
 0x6b4 PF: > { %s18_s27 = sadd.s32 1, %s4272_s27  }
 0x6b5   : > { %p15_p4 = scmp.ge.s32.totalorder %s18_s27, 4  }
 0x6b7   :  { %17 = sbr.rel (!%p15_p4) target bundleno = 1 (0x1), region = 106 }

</bundles_post_ra>
